<compile_context>
chip_gen: v7x
topology: tpu7x:2x2x1
jax: 0.10.0
libtpu: 0.0.40
codegen_flags: <defaults>
</compile_context>

<pallas_src>
import functools

import jax
import jax.numpy as jnp
from jax import lax
from jax.experimental import pallas as pl
from jax.experimental.pallas import tpu as pltpu

EPS = 1e-5


def identity_block_kernel(x_ref, w1_ref, w2_ref, w3_ref,
                          g1_ref, b1_ref, g2_ref, b2_ref, g3_ref, b3_ref,
                          out_ref, *, H, W, F1, F2):
    # x_ref/out_ref: (N*H, W*C) lane-dense packed f32 activations.
    # w1_ref: (W*Cin, W*F1) bf16; w2_ref: (9, W*F1, W*F2) bf16 (one block-
    #   diagonal weight per 3x3 tap); w3_ref: (W*F2, W*F3) bf16.
    # g*/b*: (1, C) f32 batchnorm gamma / beta.
    NH = x_ref.shape[0]            # N * H
    WF1 = W * F1
    WF2 = W * F2
    n_pix = NH * W                 # N * H * W

    x = x_ref[...]                 # f32; kept full precision for the residual

    def batchnorm(h, g_ref, b_ref):
        # Training-mode BN with batch stats over all N*H*W pixels (biased var).
        # h is packed (N*H, W*C) f32: reduce rows in the lane-dense layout,
        # then fold the W spatial groups into per-channel sums with one tiny
        # exact matmul (0/1 matrix, f32 HIGHEST) instead of a serial W-long
        # lane-slice+add chain.
        C = g_ref.shape[1]
        stats = jnp.concatenate(
            [jnp.sum(h, axis=0, keepdims=True),
             jnp.sum(h * h, axis=0, keepdims=True)], axis=0)        # (2, W*C)
        fold = (lax.broadcasted_iota(jnp.int32, (W * C, C), 0) % C
                == lax.broadcasted_iota(jnp.int32, (W * C, C), 1)
                ).astype(jnp.float32)                               # (W*C, C)
        ch = jnp.dot(stats, fold, preferred_element_type=jnp.float32,
                     precision=lax.Precision.HIGHEST)               # (2, C)
        mean = ch[0:1, :] / n_pix
        var = ch[1:2, :] / n_pix - mean * mean                      # biased
        scale = g_ref[...] * lax.rsqrt(var + EPS)                   # (1, C)
        shift = b_ref[...] - mean * scale                           # (1, C)
        # Re-broadcast per-channel scale/shift to the packed (1, W*C) layout
        # with the transposed 0/1 matmul (MXU) instead of a W-way lane concat.
        unfold = (lax.broadcasted_iota(jnp.int32, (C, W * C), 1) % C
                  == lax.broadcasted_iota(jnp.int32, (C, W * C), 0)
                  ).astype(jnp.float32)                             # (C, W*C)
        ss = jnp.dot(jnp.concatenate([scale, shift], axis=0), unfold,
                     preferred_element_type=jnp.float32,
                     precision=lax.Precision.HIGHEST)               # (2, W*C)
        return h * ss[0:1, :] + ss[1:2, :]

    # --- conv1: 1x1 conv == packed bf16 matmul vs block-diagonal weight -----
    h1 = jnp.dot(x.astype(jnp.bfloat16), w1_ref[...],
                 preferred_element_type=jnp.float32)                # (NH, W*F1)
    h1 = jnp.maximum(batchnorm(h1, g1_ref, b1_ref), 0.0)

    # --- conv2: 3x3, stride 1, pad 1 -----------------------------------------
    # Row (y) shifted copies of h1 are built ONCE (reused by the three kx taps
    # of each ky) and kept in bf16; x-direction overflow is exactly the zero
    # padding because the lane axis spans a full image row; rows whose source
    # crosses an image boundary inside the batch are masked via the (NH, 1)
    # y-coordinate column.
    h1_bf = h1.astype(jnp.bfloat16)
    y = lax.broadcasted_iota(jnp.int32, (NH, 1), 0) % H             # (NH, 1)

    def shift_rows(a, dy):        # out[r] = a[r + dy], zeroed across image edge
        if dy == 0:
            return a
        z = jnp.zeros((abs(dy), WF1), jnp.bfloat16)
        if dy > 0:
            a = jnp.concatenate([a[dy:, :], z], axis=0)
        else:
            a = jnp.concatenate([z, a[:dy, :]], axis=0)
        return jnp.where((y + dy >= 0) & (y + dy < H), a, 0.0)

    def shift_cols(a, dx):        # out[:, x] = a[:, x + dx] (zero x-padding)
        if dx == 0:
            return a
        k = abs(dx) * F1
        z = jnp.zeros((NH, k), jnp.bfloat16)
        if dx > 0:
            return jnp.concatenate([a[:, k:], z], axis=1)
        return jnp.concatenate([z, a[:, :WF1 - k]], axis=1)

    rows = [shift_rows(h1_bf, dy) for dy in (-1, 0, 1)]             # hoisted

    # Nine per-tap matmuls accumulated into one f32 buffer (no 9x-activation
    # im2col concat living in VMEM).
    h2 = jnp.zeros((NH, WF2), jnp.float32)
    for ky in range(3):
        for kx in range(3):
            win = shift_cols(rows[ky], kx - 1)
            h2 = h2 + jnp.dot(win, w2_ref[ky * 3 + kx],
                              preferred_element_type=jnp.float32)
    h2 = jnp.maximum(batchnorm(h2, g2_ref, b2_ref), 0.0)            # (NH, W*F2)

    # --- conv3: 1x1 conv ------------------------------------------------------
    h3 = jnp.dot(h2.astype(jnp.bfloat16), w3_ref[...],
                 preferred_element_type=jnp.float32)                # (NH, W*F3)
    h3 = batchnorm(h3, g3_ref, b3_ref)

    # --- residual + final relu; lane-dense (multiple-of-128) store ----------
    out_ref[...] = jnp.maximum(h3 + x, 0.0).astype(out_ref.dtype)


def _vmem_limit_bytes():
    # Per-generation VMEM budget: physical capacity minus headroom
    # (~112 MiB on v5e/v6e's 128 MiB, ~48 MiB on v7x's 64 MiB).
    try:
        cap = int(pltpu.get_tpu_info().vmem_capacity_bytes)
    except Exception:
        cap = 64 * 1024 * 1024
    return max(cap - 16 * 1024 * 1024, 32 * 1024 * 1024)


def identity_block(x_nchw, params):
    """IdentityBlock forward.  x_nchw: (N, Cin, H, W) f32 -> (N, Cin, H, W)."""
    N, Cin, H, W = x_nchw.shape
    w1, w2, w3 = params["w1"], params["w2"], params["w3"]
    F1, F2, F3 = w1.shape[1], w2.shape[3], w3.shape[1]
    assert F3 == Cin, "residual add requires filters3 == in_planes"

    # NCHW -> NHWC -> lane-dense packed 2D (N*H, W*C); here W*Cin = 128.
    x_packed = jnp.transpose(x_nchw, (0, 2, 3, 1)).reshape(N * H, W * Cin)

    # Block-diagonal ("per-pixel") weights acting on the packed layout, cast to
    # bf16 for the MXU.  TODO(synk): at production W this kron layout is O(W^2)
    # in VMEM / FLOPs — switch to true (Cin, F) weights with a W-blocked grid.
    eye_w = jnp.eye(W, dtype=jnp.float32)
    w1_bd = jnp.kron(eye_w, w1).astype(jnp.bfloat16)                # (W*Cin, W*F1)
    w3_bd = jnp.kron(eye_w, w3).astype(jnp.bfloat16)                # (W*F2, W*F3)
    w2_taps = jnp.stack(
        [jnp.kron(eye_w, w2[ky, kx]) for ky in range(3) for kx in range(3)],
        axis=0).astype(jnp.bfloat16)                                # (9, W*F1, W*F2)

    # True convolution FLOPs (the kron zero blocks are not real work).
    flops = 2 * N * H * W * (Cin * F1 + 9 * F1 * F2 + F2 * F3)
    bytes_accessed = (4 * x_packed.size
                      + 2 * (w1_bd.size + w2_taps.size + w3_bd.size)
                      + 4 * 2 * (F1 + F2 + F3)
                      + 4 * N * H * W * F3)

    vmem_spec = pl.BlockSpec(memory_space=pltpu.MemorySpace.VMEM)
    out_packed = pl.pallas_call(
        functools.partial(identity_block_kernel, H=H, W=W, F1=F1, F2=F2),
        out_shape=jax.ShapeDtypeStruct((N * H, W * F3), x_nchw.dtype),
        in_specs=[vmem_spec] * 10,
        out_specs=vmem_spec,
        compiler_params=pltpu.CompilerParams(
            vmem_limit_bytes=_vmem_limit_bytes()),
        cost_estimate=pl.CostEstimate(flops=flops,
                                      transcendentals=F1 + F2 + F3,
                                      bytes_accessed=bytes_accessed),
    )(x_packed, w1_bd, w2_taps, w3_bd,
      params["g1"], params["b1"], params["g2"], params["b2"],
      params["g3"], params["b3"])

    return jnp.transpose(out_packed.reshape(N, H, W, F3), (0, 3, 1, 2))


# ---------------------------------------------------------------------------
# Pure-JAX reference (NCHW, lax.conv).  Conv inputs are cast to bf16 with f32
# accumulation to mirror the kernel's MXU path; BN / residual / relu stay f32.
# ---------------------------------------------------------------------------
def ref_identity_block(x, oihw):
    def conv(h, w, pad):
        return lax.conv_general_dilated(
            h.astype(jnp.bfloat16), w.astype(jnp.bfloat16),
            window_strides=(1, 1), padding=pad,
            dimension_numbers=("NCHW", "OIHW", "NCHW"),
            preferred_element_type=jnp.float32)

    def bn(h, g, b):
        mean = h.mean(axis=(0, 2, 3), keepdims=True)
        var = ((h - mean) ** 2).mean(axis=(0, 2, 3), keepdims=True)
        return ((h - mean) * lax.rsqrt(var + EPS)
                * g.reshape(1, -1, 1, 1) + b.reshape(1, -1, 1, 1))

    out = jax.nn.relu(bn(conv(x, oihw["w1"], "VALID"), oihw["g1"], oihw["b1"]))
    out = jax.nn.relu(bn(conv(out, oihw["w2"], [(1, 1), (1, 1)]),
                         oihw["g2"], oihw["b2"]))
    out = bn(conv(out, oihw["w3"], "VALID"), oihw["g3"], oihw["b3"])
    return jax.nn.relu(out + x)


if __name__ == "__main__":
    # IdentityBlock(in_planes=16, filters=(8, 8, 16), kernel_size=3)
    N, Cin, H, W = 2, 16, 8, 8
    F1, F2, F3 = 8, 8, 16            # F3 == Cin for the residual add

    key = jax.random.PRNGKey(0)
    kx_, k1, k2, k3 = jax.random.split(key, 4)

    x = jax.random.normal(kx_, (N, Cin, H, W), jnp.float32)

    # PyTorch-layout (OIHW) conv weights, deterministic init.
    w1_oihw = 0.1 * jax.random.normal(k1, (F1, Cin, 1, 1), jnp.float32)
    w2_oihw = 0.1 * jax.random.normal(k2, (F2, F1, 3, 3), jnp.float32)
    w3_oihw = 0.1 * jax.random.normal(k3, (F3, F2, 1, 1), jnp.float32)
    # BatchNorm default init: gamma = 1, beta = 0.
    g1, b1 = jnp.ones((F1,), jnp.float32), jnp.zeros((F1,), jnp.float32)
    g2, b2 = jnp.ones((F2,), jnp.float32), jnp.zeros((F2,), jnp.float32)
    g3, b3 = jnp.ones((F3,), jnp.float32), jnp.zeros((F3,), jnp.float32)

    # Kernel-layout parameters.
    params = {
        "w1": jnp.transpose(w1_oihw[:, :, 0, 0], (1, 0)),     # (Cin, F1)
        "w2": jnp.transpose(w2_oihw, (2, 3, 1, 0)),           # (3, 3, F1, F2)
        "w3": jnp.transpose(w3_oihw[:, :, 0, 0], (1, 0)),     # (F2, F3)
        "g1": g1.reshape(1, F1), "b1": b1.reshape(1, F1),
        "g2": g2.reshape(1, F2), "b2": b2.reshape(1, F2),
        "g3": g3.reshape(1, F3), "b3": b3.reshape(1, F3),
    }
    oihw = {"w1": w1_oihw, "w2": w2_oihw, "w3": w3_oihw,
            "g1": g1, "b1": b1, "g2": g2, "b2": b2, "g3": g3, "b3": b3}

    out = jax.block_until_ready(identity_block(x, params))
    ref = jax.block_until_ready(ref_identity_block(x, oihw))

    assert out.shape == (N, Cin, H, W)
    # bf16 MXU operands in both the kernel and the reference's convs, so the
    # tolerance is looser than the old f32/HIGHEST 1e-4 (per perf review).
    max_err = float(jnp.max(jnp.abs(out - ref)))
    assert max_err < 2e-2, f"mismatch vs reference: max abs err = {max_err}"
    print("KERNEL_OK")
</pallas_src>

<mosaic_0001>
module attributes {stable_mosaic.version = 11 : i64} {
  func.func @identity_block_kernel(%arg0: memref<16x128xf32, #tpu.memory_space<vmem>>, %arg1: memref<128x64xbf16, #tpu.memory_space<vmem>>, %arg2: memref<9x64x64xbf16, #tpu.memory_space<vmem>>, %arg3: memref<64x128xbf16, #tpu.memory_space<vmem>>, %arg4: memref<1x8xf32, #tpu.memory_space<vmem>>, %arg5: memref<1x8xf32, #tpu.memory_space<vmem>>, %arg6: memref<1x8xf32, #tpu.memory_space<vmem>>, %arg7: memref<1x8xf32, #tpu.memory_space<vmem>>, %arg8: memref<1x16xf32, #tpu.memory_space<vmem>>, %arg9: memref<1x16xf32, #tpu.memory_space<vmem>>, %arg10: memref<16x128xf32, #tpu.memory_space<vmem>>) attributes {dimension_semantics = [], scalar_prefetch = 0 : i64, scratch_operands = 0 : i64, tpu.core_type = #tpu.core_type<tc>} {
    %c0 = arith.constant 0 : index
    %c0_0 = arith.constant 0 : index
    %0 = vector.load %arg0[%c0, %c0_0] : memref<16x128xf32, #tpu.memory_space<vmem>>, vector<16x128xf32>
    %1 = arith.truncf %0 : vector<16x128xf32> to vector<16x128xbf16>
    %c0_1 = arith.constant 0 : index
    %c0_2 = arith.constant 0 : index
    %2 = vector.load %arg1[%c0_1, %c0_2] : memref<128x64xbf16, #tpu.memory_space<vmem>>, vector<128x64xbf16>
    %cst = arith.constant dense<0.000000e+00> : vector<16x64xf32>
    %3 = tpu.matmul %1, %2, %cst {dimension_numbers = #tpu.dot_dimension_numbers<[1], [0], [0], [1], [0, 0, 1, 1], [], []>} : vector<16x128xbf16>, vector<128x64xbf16>, vector<16x64xf32> -> vector<16x64xf32>
    %cst_3 = arith.constant dense<0.000000e+00> : vector<64xf32>
    %4 = vector.multi_reduction <add>, %3, %cst_3 [0] : vector<16x64xf32> to vector<64xf32>
    %5 = vector.shape_cast %4 : vector<64xf32> to vector<1x64xf32>
    %6 = arith.mulf %3, %3 : vector<16x64xf32>
    %cst_4 = arith.constant dense<0.000000e+00> : vector<64xf32>
    %7 = vector.multi_reduction <add>, %6, %cst_4 [0] : vector<16x64xf32> to vector<64xf32>
    %8 = vector.shape_cast %7 : vector<64xf32> to vector<1x64xf32>
    %9 = tpu.concatenate %5, %8 in 0 : vector<1x64xf32>, vector<1x64xf32> -> vector<2x64xf32>
    %10 = tpu.iota {dimensions = array<i32: 0>} : vector<64x8xi32>
    %c8_i32 = arith.constant 8 : i32
    %c0_i32 = arith.constant 0 : i32
    %11 = arith.cmpi eq, %c8_i32, %c0_i32 : i32
    %c1_i32 = arith.constant 1 : i32
    %12 = arith.select %11, %c1_i32, %c8_i32 : i32
    %13 = vector.broadcast %12 : i32 to vector<64x8xi32>
    %14 = arith.remsi %10, %13 : vector<64x8xi32>
    %c0_i32_5 = arith.constant 0 : i32
    %15 = vector.broadcast %c0_i32_5 : i32 to vector<64x8xi32>
    %16 = arith.cmpi ne, %14, %15 : vector<64x8xi32>
    %c0_i32_6 = arith.constant 0 : i32
    %17 = vector.broadcast %c0_i32_6 : i32 to vector<64x8xi32>
    %18 = arith.cmpi slt, %14, %17 : vector<64x8xi32>
    %c0_i32_7 = arith.constant 0 : i32
    %19 = arith.cmpi slt, %12, %c0_i32_7 : i32
    %20 = vector.broadcast %19 : i1 to vector<64x8xi1>
    %21 = vector.broadcast %20 : vector<64x8xi1> to vector<64x8xi1>
    %22 = arith.xori %18, %21 : vector<64x8xi1>
    %23 = arith.andi %22, %16 : vector<64x8xi1>
    %24 = vector.broadcast %12 : i32 to vector<64x8xi32>
    %25 = arith.addi %14, %24 : vector<64x8xi32>
    %26 = arith.select %23, %25, %14 : vector<64x8xi1>, vector<64x8xi32>
    %27 = tpu.iota {dimensions = array<i32: 1>} : vector<64x8xi32>
    %28 = arith.cmpi eq, %26, %27 : vector<64x8xi32>
    %29 = arith.extui %28 : vector<64x8xi1> to vector<64x8xi32>
    %30 = arith.sitofp %29 : vector<64x8xi32> to vector<64x8xf32>
    %cst_8 = arith.constant dense<0.000000e+00> : vector<2x8xf32>
    %31 = tpu.matmul %9, %30, %cst_8 {dimension_numbers = #tpu.dot_dimension_numbers<[1], [0], [0], [1], [0, 0, 1, 1], [], []>, precision = #tpu.contract_precision<fp32>} : vector<2x64xf32>, vector<64x8xf32>, vector<2x8xf32> -> vector<2x8xf32>
    %32 = vector.extract_strided_slice %31 {offsets = [0, 0], sizes = [1, 8], strides = [1, 1]} : vector<2x8xf32> to vector<1x8xf32>
    %cst_9 = arith.constant 1.280000e+02 : f32
    %33 = vector.broadcast %cst_9 : f32 to vector<1x8xf32>
    %34 = arith.divf %32, %33 : vector<1x8xf32>
    %35 = vector.extract_strided_slice %31 {offsets = [1, 0], sizes = [1, 8], strides = [1, 1]} : vector<2x8xf32> to vector<1x8xf32>
    %cst_10 = arith.constant 1.280000e+02 : f32
    %36 = vector.broadcast %cst_10 : f32 to vector<1x8xf32>
    %37 = arith.divf %35, %36 : vector<1x8xf32>
    %38 = arith.mulf %34, %34 : vector<1x8xf32>
    %39 = arith.subf %37, %38 : vector<1x8xf32>
    %c0_11 = arith.constant 0 : index
    %c0_12 = arith.constant 0 : index
    %40 = vector.load %arg4[%c0_11, %c0_12] : memref<1x8xf32, #tpu.memory_space<vmem>>, vector<1x8xf32>
    %cst_13 = arith.constant 9.99999974E-6 : f32
    %41 = vector.broadcast %cst_13 : f32 to vector<1x8xf32>
    %42 = arith.addf %39, %41 : vector<1x8xf32>
    %43 = math.rsqrt %42 : vector<1x8xf32>
    %44 = arith.mulf %40, %43 : vector<1x8xf32>
    %c0_14 = arith.constant 0 : index
    %c0_15 = arith.constant 0 : index
    %45 = vector.load %arg5[%c0_14, %c0_15] : memref<1x8xf32, #tpu.memory_space<vmem>>, vector<1x8xf32>
    %46 = arith.mulf %34, %44 : vector<1x8xf32>
    %47 = arith.subf %45, %46 : vector<1x8xf32>
    %48 = tpu.iota {dimensions = array<i32: 1>} : vector<8x64xi32>
    %c8_i32_16 = arith.constant 8 : i32
    %c0_i32_17 = arith.constant 0 : i32
    %49 = arith.cmpi eq, %c8_i32_16, %c0_i32_17 : i32
    %c1_i32_18 = arith.constant 1 : i32
    %50 = arith.select %49, %c1_i32_18, %c8_i32_16 : i32
    %51 = vector.broadcast %50 : i32 to vector<8x64xi32>
    %52 = arith.remsi %48, %51 : vector<8x64xi32>
    %c0_i32_19 = arith.constant 0 : i32
    %53 = vector.broadcast %c0_i32_19 : i32 to vector<8x64xi32>
    %54 = arith.cmpi ne, %52, %53 : vector<8x64xi32>
    %c0_i32_20 = arith.constant 0 : i32
    %55 = vector.broadcast %c0_i32_20 : i32 to vector<8x64xi32>
    %56 = arith.cmpi slt, %52, %55 : vector<8x64xi32>
    %c0_i32_21 = arith.constant 0 : i32
    %57 = arith.cmpi slt, %50, %c0_i32_21 : i32
    %58 = vector.broadcast %57 : i1 to vector<8x64xi1>
    %59 = vector.broadcast %58 : vector<8x64xi1> to vector<8x64xi1>
    %60 = arith.xori %56, %59 : vector<8x64xi1>
    %61 = arith.andi %60, %54 : vector<8x64xi1>
    %62 = vector.broadcast %50 : i32 to vector<8x64xi32>
    %63 = arith.addi %52, %62 : vector<8x64xi32>
    %64 = arith.select %61, %63, %52 : vector<8x64xi1>, vector<8x64xi32>
    %65 = tpu.iota {dimensions = array<i32: 0>} : vector<8x64xi32>
    %66 = arith.cmpi eq, %64, %65 : vector<8x64xi32>
    %67 = arith.extui %66 : vector<8x64xi1> to vector<8x64xi32>
    %68 = arith.sitofp %67 : vector<8x64xi32> to vector<8x64xf32>
    %69 = tpu.concatenate %44, %47 in 0 : vector<1x8xf32>, vector<1x8xf32> -> vector<2x8xf32>
    %cst_22 = arith.constant dense<0.000000e+00> : vector<2x64xf32>
    %70 = tpu.matmul %69, %68, %cst_22 {dimension_numbers = #tpu.dot_dimension_numbers<[1], [0], [0], [1], [0, 0, 1, 1], [], []>, precision = #tpu.contract_precision<fp32>} : vector<2x8xf32>, vector<8x64xf32>, vector<2x64xf32> -> vector<2x64xf32>
    %71 = vector.extract_strided_slice %70 {offsets = [0, 0], sizes = [1, 64], strides = [1, 1]} : vector<2x64xf32> to vector<1x64xf32>
    %72 = vector.broadcast %71 : vector<1x64xf32> to vector<16x64xf32>
    %73 = arith.mulf %3, %72 : vector<16x64xf32>
    %74 = vector.extract_strided_slice %70 {offsets = [1, 0], sizes = [1, 64], strides = [1, 1]} : vector<2x64xf32> to vector<1x64xf32>
    %75 = vector.broadcast %74 : vector<1x64xf32> to vector<16x64xf32>
    %76 = arith.addf %73, %75 : vector<16x64xf32>
    %cst_23 = arith.constant 0.000000e+00 : f32
    %77 = vector.broadcast %cst_23 : f32 to vector<16x64xf32>
    %78 = arith.maximumf %76, %77 : vector<16x64xf32>
    %79 = arith.truncf %78 : vector<16x64xf32> to vector<16x64xbf16>
    %80 = tpu.iota {dimensions = array<i32: 0>} : vector<16x1xi32>
    %c8_i32_24 = arith.constant 8 : i32
    %c0_i32_25 = arith.constant 0 : i32
    %81 = arith.cmpi eq, %c8_i32_24, %c0_i32_25 : i32
    %c1_i32_26 = arith.constant 1 : i32
    %82 = arith.select %81, %c1_i32_26, %c8_i32_24 : i32
    %83 = vector.broadcast %82 : i32 to vector<16x1xi32>
    %84 = arith.remsi %80, %83 : vector<16x1xi32>
    %c0_i32_27 = arith.constant 0 : i32
    %85 = vector.broadcast %c0_i32_27 : i32 to vector<16x1xi32>
    %86 = arith.cmpi ne, %84, %85 : vector<16x1xi32>
    %c0_i32_28 = arith.constant 0 : i32
    %87 = vector.broadcast %c0_i32_28 : i32 to vector<16x1xi32>
    %88 = arith.cmpi slt, %84, %87 : vector<16x1xi32>
    %c0_i32_29 = arith.constant 0 : i32
    %89 = arith.cmpi slt, %82, %c0_i32_29 : i32
    %90 = vector.broadcast %89 : i1 to vector<16x1xi1>
    %91 = vector.broadcast %90 : vector<16x1xi1> to vector<16x1xi1>
    %92 = arith.xori %88, %91 : vector<16x1xi1>
    %93 = arith.andi %92, %86 : vector<16x1xi1>
    %94 = vector.broadcast %82 : i32 to vector<16x1xi32>
    %95 = arith.addi %84, %94 : vector<16x1xi32>
    %96 = arith.select %93, %95, %84 : vector<16x1xi1>, vector<16x1xi32>
    %cst_30 = arith.constant 0.000000e+00 : bf16
    %97 = vector.broadcast %cst_30 : bf16 to vector<1x64xbf16>
    %98 = vector.extract_strided_slice %79 {offsets = [0, 0], sizes = [15, 64], strides = [1, 1]} : vector<16x64xbf16> to vector<15x64xbf16>
    %99 = tpu.concatenate %97, %98 in 0 : vector<1x64xbf16>, vector<15x64xbf16> -> vector<16x64xbf16>
    %c-1_i32 = arith.constant -1 : i32
    %100 = vector.broadcast %c-1_i32 : i32 to vector<16x1xi32>
    %101 = arith.addi %96, %100 : vector<16x1xi32>
    %c0_i32_31 = arith.constant 0 : i32
    %102 = vector.broadcast %c0_i32_31 : i32 to vector<16x1xi32>
    %103 = arith.cmpi sge, %101, %102 : vector<16x1xi32>
    %c-1_i32_32 = arith.constant -1 : i32
    %104 = vector.broadcast %c-1_i32_32 : i32 to vector<16x1xi32>
    %105 = arith.addi %96, %104 : vector<16x1xi32>
    %c8_i32_33 = arith.constant 8 : i32
    %106 = vector.broadcast %c8_i32_33 : i32 to vector<16x1xi32>
    %107 = arith.cmpi slt, %105, %106 : vector<16x1xi32>
    %108 = arith.andi %103, %107 : vector<16x1xi1>
    %cst_34 = arith.constant 0.000000e+00 : f32
    %109 = arith.truncf %cst_34 : f32 to bf16
    %110 = vector.shape_cast %108 : vector<16x1xi1> to vector<16x1xi1>
    %111 = vector.broadcast %110 : vector<16x1xi1> to vector<16x64xi1>
    %112 = vector.broadcast %109 : bf16 to vector<16x64xbf16>
    %113 = arith.select %111, %99, %112 : vector<16x64xi1>, vector<16x64xbf16>
    %cst_35 = arith.constant 0.000000e+00 : bf16
    %114 = vector.broadcast %cst_35 : bf16 to vector<1x64xbf16>
    %115 = vector.extract_strided_slice %79 {offsets = [1, 0], sizes = [15, 64], strides = [1, 1]} : vector<16x64xbf16> to vector<15x64xbf16>
    %116 = tpu.concatenate %115, %114 in 0 : vector<15x64xbf16>, vector<1x64xbf16> -> vector<16x64xbf16>
    %c1_i32_36 = arith.constant 1 : i32
    %117 = vector.broadcast %c1_i32_36 : i32 to vector<16x1xi32>
    %118 = arith.addi %96, %117 : vector<16x1xi32>
    %c0_i32_37 = arith.constant 0 : i32
    %119 = vector.broadcast %c0_i32_37 : i32 to vector<16x1xi32>
    %120 = arith.cmpi sge, %118, %119 : vector<16x1xi32>
    %c1_i32_38 = arith.constant 1 : i32
    %121 = vector.broadcast %c1_i32_38 : i32 to vector<16x1xi32>
    %122 = arith.addi %96, %121 : vector<16x1xi32>
    %c8_i32_39 = arith.constant 8 : i32
    %123 = vector.broadcast %c8_i32_39 : i32 to vector<16x1xi32>
    %124 = arith.cmpi slt, %122, %123 : vector<16x1xi32>
    %125 = arith.andi %120, %124 : vector<16x1xi1>
    %cst_40 = arith.constant 0.000000e+00 : f32
    %126 = arith.truncf %cst_40 : f32 to bf16
    %127 = vector.shape_cast %125 : vector<16x1xi1> to vector<16x1xi1>
    %128 = vector.broadcast %127 : vector<16x1xi1> to vector<16x64xi1>
    %129 = vector.broadcast %126 : bf16 to vector<16x64xbf16>
    %130 = arith.select %128, %116, %129 : vector<16x64xi1>, vector<16x64xbf16>
    %cst_41 = arith.constant 0.000000e+00 : f32
    %131 = vector.broadcast %cst_41 : f32 to vector<16x64xf32>
    %cst_42 = arith.constant 0.000000e+00 : bf16
    %132 = vector.broadcast %cst_42 : bf16 to vector<16x8xbf16>
    %133 = vector.extract_strided_slice %113 {offsets = [0, 0], sizes = [16, 56], strides = [1, 1]} : vector<16x64xbf16> to vector<16x56xbf16>
    %134 = tpu.concatenate %132, %133 in 1 : vector<16x8xbf16>, vector<16x56xbf16> -> vector<16x64xbf16>
    %c0_43 = arith.constant 0 : index
    %c0_44 = arith.constant 0 : index
    %c0_45 = arith.constant 0 : index
    %135 = vector.load %arg2[%c0_43, %c0_44, %c0_45] : memref<9x64x64xbf16, #tpu.memory_space<vmem>>, vector<1x64x64xbf16>
    %136 = vector.shape_cast %135 : vector<1x64x64xbf16> to vector<64x64xbf16>
    %cst_46 = arith.constant dense<0.000000e+00> : vector<16x64xf32>
    %137 = tpu.matmul %134, %136, %cst_46 {dimension_numbers = #tpu.dot_dimension_numbers<[1], [0], [0], [1], [0, 0, 1, 1], [], []>} : vector<16x64xbf16>, vector<64x64xbf16>, vector<16x64xf32> -> vector<16x64xf32>
    %138 = arith.addf %131, %137 : vector<16x64xf32>
    %c1 = arith.constant 1 : index
    %c0_47 = arith.constant 0 : index
    %c0_48 = arith.constant 0 : index
    %139 = vector.load %arg2[%c1, %c0_47, %c0_48] : memref<9x64x64xbf16, #tpu.memory_space<vmem>>, vector<1x64x64xbf16>
    %140 = vector.shape_cast %139 : vector<1x64x64xbf16> to vector<64x64xbf16>
    %cst_49 = arith.constant dense<0.000000e+00> : vector<16x64xf32>
    %141 = tpu.matmul %113, %140, %cst_49 {dimension_numbers = #tpu.dot_dimension_numbers<[1], [0], [0], [1], [0, 0, 1, 1], [], []>} : vector<16x64xbf16>, vector<64x64xbf16>, vector<16x64xf32> -> vector<16x64xf32>
    %142 = arith.addf %138, %141 : vector<16x64xf32>
    %cst_50 = arith.constant 0.000000e+00 : bf16
    %143 = vector.broadcast %cst_50 : bf16 to vector<16x8xbf16>
    %144 = vector.extract_strided_slice %113 {offsets = [0, 8], sizes = [16, 56], strides = [1, 1]} : vector<16x64xbf16> to vector<16x56xbf16>
    %145 = tpu.concatenate %144, %143 in 1 : vector<16x56xbf16>, vector<16x8xbf16> -> vector<16x64xbf16>
    %c2 = arith.constant 2 : index
    %c0_51 = arith.constant 0 : index
    %c0_52 = arith.constant 0 : index
    %146 = vector.load %arg2[%c2, %c0_51, %c0_52] : memref<9x64x64xbf16, #tpu.memory_space<vmem>>, vector<1x64x64xbf16>
    %147 = vector.shape_cast %146 : vector<1x64x64xbf16> to vector<64x64xbf16>
    %cst_53 = arith.constant dense<0.000000e+00> : vector<16x64xf32>
    %148 = tpu.matmul %145, %147, %cst_53 {dimension_numbers = #tpu.dot_dimension_numbers<[1], [0], [0], [1], [0, 0, 1, 1], [], []>} : vector<16x64xbf16>, vector<64x64xbf16>, vector<16x64xf32> -> vector<16x64xf32>
    %149 = arith.addf %142, %148 : vector<16x64xf32>
    %cst_54 = arith.constant 0.000000e+00 : bf16
    %150 = vector.broadcast %cst_54 : bf16 to vector<16x8xbf16>
    %151 = vector.extract_strided_slice %79 {offsets = [0, 0], sizes = [16, 56], strides = [1, 1]} : vector<16x64xbf16> to vector<16x56xbf16>
    %152 = tpu.concatenate %150, %151 in 1 : vector<16x8xbf16>, vector<16x56xbf16> -> vector<16x64xbf16>
    %c3 = arith.constant 3 : index
    %c0_55 = arith.constant 0 : index
    %c0_56 = arith.constant 0 : index
    %153 = vector.load %arg2[%c3, %c0_55, %c0_56] : memref<9x64x64xbf16, #tpu.memory_space<vmem>>, vector<1x64x64xbf16>
    %154 = vector.shape_cast %153 : vector<1x64x64xbf16> to vector<64x64xbf16>
    %cst_57 = arith.constant dense<0.000000e+00> : vector<16x64xf32>
    %155 = tpu.matmul %152, %154, %cst_57 {dimension_numbers = #tpu.dot_dimension_numbers<[1], [0], [0], [1], [0, 0, 1, 1], [], []>} : vector<16x64xbf16>, vector<64x64xbf16>, vector<16x64xf32> -> vector<16x64xf32>
    %156 = arith.addf %149, %155 : vector<16x64xf32>
    %c4 = arith.constant 4 : index
    %c0_58 = arith.constant 0 : index
    %c0_59 = arith.constant 0 : index
    %157 = vector.load %arg2[%c4, %c0_58, %c0_59] : memref<9x64x64xbf16, #tpu.memory_space<vmem>>, vector<1x64x64xbf16>
    %158 = vector.shape_cast %157 : vector<1x64x64xbf16> to vector<64x64xbf16>
    %cst_60 = arith.constant dense<0.000000e+00> : vector<16x64xf32>
    %159 = tpu.matmul %79, %158, %cst_60 {dimension_numbers = #tpu.dot_dimension_numbers<[1], [0], [0], [1], [0, 0, 1, 1], [], []>} : vector<16x64xbf16>, vector<64x64xbf16>, vector<16x64xf32> -> vector<16x64xf32>
    %160 = arith.addf %156, %159 : vector<16x64xf32>
    %cst_61 = arith.constant 0.000000e+00 : bf16
    %161 = vector.broadcast %cst_61 : bf16 to vector<16x8xbf16>
    %162 = vector.extract_strided_slice %79 {offsets = [0, 8], sizes = [16, 56], strides = [1, 1]} : vector<16x64xbf16> to vector<16x56xbf16>
    %163 = tpu.concatenate %162, %161 in 1 : vector<16x56xbf16>, vector<16x8xbf16> -> vector<16x64xbf16>
    %c5 = arith.constant 5 : index
    %c0_62 = arith.constant 0 : index
    %c0_63 = arith.constant 0 : index
    %164 = vector.load %arg2[%c5, %c0_62, %c0_63] : memref<9x64x64xbf16, #tpu.memory_space<vmem>>, vector<1x64x64xbf16>
    %165 = vector.shape_cast %164 : vector<1x64x64xbf16> to vector<64x64xbf16>
    %cst_64 = arith.constant dense<0.000000e+00> : vector<16x64xf32>
    %166 = tpu.matmul %163, %165, %cst_64 {dimension_numbers = #tpu.dot_dimension_numbers<[1], [0], [0], [1], [0, 0, 1, 1], [], []>} : vector<16x64xbf16>, vector<64x64xbf16>, vector<16x64xf32> -> vector<16x64xf32>
    %167 = arith.addf %160, %166 : vector<16x64xf32>
    %cst_65 = arith.constant 0.000000e+00 : bf16
    %168 = vector.broadcast %cst_65 : bf16 to vector<16x8xbf16>
    %169 = vector.extract_strided_slice %130 {offsets = [0, 0], sizes = [16, 56], strides = [1, 1]} : vector<16x64xbf16> to vector<16x56xbf16>
    %170 = tpu.concatenate %168, %169 in 1 : vector<16x8xbf16>, vector<16x56xbf16> -> vector<16x64xbf16>
    %c6 = arith.constant 6 : index
    %c0_66 = arith.constant 0 : index
    %c0_67 = arith.constant 0 : index
    %171 = vector.load %arg2[%c6, %c0_66, %c0_67] : memref<9x64x64xbf16, #tpu.memory_space<vmem>>, vector<1x64x64xbf16>
    %172 = vector.shape_cast %171 : vector<1x64x64xbf16> to vector<64x64xbf16>
    %cst_68 = arith.constant dense<0.000000e+00> : vector<16x64xf32>
    %173 = tpu.matmul %170, %172, %cst_68 {dimension_numbers = #tpu.dot_dimension_numbers<[1], [0], [0], [1], [0, 0, 1, 1], [], []>} : vector<16x64xbf16>, vector<64x64xbf16>, vector<16x64xf32> -> vector<16x64xf32>
    %174 = arith.addf %167, %173 : vector<16x64xf32>
    %c7 = arith.constant 7 : index
    %c0_69 = arith.constant 0 : index
    %c0_70 = arith.constant 0 : index
    %175 = vector.load %arg2[%c7, %c0_69, %c0_70] : memref<9x64x64xbf16, #tpu.memory_space<vmem>>, vector<1x64x64xbf16>
    %176 = vector.shape_cast %175 : vector<1x64x64xbf16> to vector<64x64xbf16>
    %cst_71 = arith.constant dense<0.000000e+00> : vector<16x64xf32>
    %177 = tpu.matmul %130, %176, %cst_71 {dimension_numbers = #tpu.dot_dimension_numbers<[1], [0], [0], [1], [0, 0, 1, 1], [], []>} : vector<16x64xbf16>, vector<64x64xbf16>, vector<16x64xf32> -> vector<16x64xf32>
    %178 = arith.addf %174, %177 : vector<16x64xf32>
    %cst_72 = arith.constant 0.000000e+00 : bf16
    %179 = vector.broadcast %cst_72 : bf16 to vector<16x8xbf16>
    %180 = vector.extract_strided_slice %130 {offsets = [0, 8], sizes = [16, 56], strides = [1, 1]} : vector<16x64xbf16> to vector<16x56xbf16>
    %181 = tpu.concatenate %180, %179 in 1 : vector<16x56xbf16>, vector<16x8xbf16> -> vector<16x64xbf16>
    %c8 = arith.constant 8 : index
    %c0_73 = arith.constant 0 : index
    %c0_74 = arith.constant 0 : index
    %182 = vector.load %arg2[%c8, %c0_73, %c0_74] : memref<9x64x64xbf16, #tpu.memory_space<vmem>>, vector<1x64x64xbf16>
    %183 = vector.shape_cast %182 : vector<1x64x64xbf16> to vector<64x64xbf16>
    %cst_75 = arith.constant dense<0.000000e+00> : vector<16x64xf32>
    %184 = tpu.matmul %181, %183, %cst_75 {dimension_numbers = #tpu.dot_dimension_numbers<[1], [0], [0], [1], [0, 0, 1, 1], [], []>} : vector<16x64xbf16>, vector<64x64xbf16>, vector<16x64xf32> -> vector<16x64xf32>
    %185 = arith.addf %178, %184 : vector<16x64xf32>
    %cst_76 = arith.constant dense<0.000000e+00> : vector<64xf32>
    %186 = vector.multi_reduction <add>, %185, %cst_76 [0] : vector<16x64xf32> to vector<64xf32>
    %187 = vector.shape_cast %186 : vector<64xf32> to vector<1x64xf32>
    %188 = arith.mulf %185, %185 : vector<16x64xf32>
    %cst_77 = arith.constant dense<0.000000e+00> : vector<64xf32>
    %189 = vector.multi_reduction <add>, %188, %cst_77 [0] : vector<16x64xf32> to vector<64xf32>
    %190 = vector.shape_cast %189 : vector<64xf32> to vector<1x64xf32>
    %191 = tpu.concatenate %187, %190 in 0 : vector<1x64xf32>, vector<1x64xf32> -> vector<2x64xf32>
    %192 = tpu.iota {dimensions = array<i32: 0>} : vector<64x8xi32>
    %c8_i32_78 = arith.constant 8 : i32
    %c0_i32_79 = arith.constant 0 : i32
    %193 = arith.cmpi eq, %c8_i32_78, %c0_i32_79 : i32
    %c1_i32_80 = arith.constant 1 : i32
    %194 = arith.select %193, %c1_i32_80, %c8_i32_78 : i32
    %195 = vector.broadcast %194 : i32 to vector<64x8xi32>
    %196 = arith.remsi %192, %195 : vector<64x8xi32>
    %c0_i32_81 = arith.constant 0 : i32
    %197 = vector.broadcast %c0_i32_81 : i32 to vector<64x8xi32>
    %198 = arith.cmpi ne, %196, %197 : vector<64x8xi32>
    %c0_i32_82 = arith.constant 0 : i32
    %199 = vector.broadcast %c0_i32_82 : i32 to vector<64x8xi32>
    %200 = arith.cmpi slt, %196, %199 : vector<64x8xi32>
    %c0_i32_83 = arith.constant 0 : i32
    %201 = arith.cmpi slt, %194, %c0_i32_83 : i32
    %202 = vector.broadcast %201 : i1 to vector<64x8xi1>
    %203 = vector.broadcast %202 : vector<64x8xi1> to vector<64x8xi1>
    %204 = arith.xori %200, %203 : vector<64x8xi1>
    %205 = arith.andi %204, %198 : vector<64x8xi1>
    %206 = vector.broadcast %194 : i32 to vector<64x8xi32>
    %207 = arith.addi %196, %206 : vector<64x8xi32>
    %208 = arith.select %205, %207, %196 : vector<64x8xi1>, vector<64x8xi32>
    %209 = tpu.iota {dimensions = array<i32: 1>} : vector<64x8xi32>
    %210 = arith.cmpi eq, %208, %209 : vector<64x8xi32>
    %211 = arith.extui %210 : vector<64x8xi1> to vector<64x8xi32>
    %212 = arith.sitofp %211 : vector<64x8xi32> to vector<64x8xf32>
    %cst_84 = arith.constant dense<0.000000e+00> : vector<2x8xf32>
    %213 = tpu.matmul %191, %212, %cst_84 {dimension_numbers = #tpu.dot_dimension_numbers<[1], [0], [0], [1], [0, 0, 1, 1], [], []>, precision = #tpu.contract_precision<fp32>} : vector<2x64xf32>, vector<64x8xf32>, vector<2x8xf32> -> vector<2x8xf32>
    %214 = vector.extract_strided_slice %213 {offsets = [0, 0], sizes = [1, 8], strides = [1, 1]} : vector<2x8xf32> to vector<1x8xf32>
    %cst_85 = arith.constant 1.280000e+02 : f32
    %215 = vector.broadcast %cst_85 : f32 to vector<1x8xf32>
    %216 = arith.divf %214, %215 : vector<1x8xf32>
    %217 = vector.extract_strided_slice %213 {offsets = [1, 0], sizes = [1, 8], strides = [1, 1]} : vector<2x8xf32> to vector<1x8xf32>
    %cst_86 = arith.constant 1.280000e+02 : f32
    %218 = vector.broadcast %cst_86 : f32 to vector<1x8xf32>
    %219 = arith.divf %217, %218 : vector<1x8xf32>
    %220 = arith.mulf %216, %216 : vector<1x8xf32>
    %221 = arith.subf %219, %220 : vector<1x8xf32>
    %c0_87 = arith.constant 0 : index
    %c0_88 = arith.constant 0 : index
    %222 = vector.load %arg6[%c0_87, %c0_88] : memref<1x8xf32, #tpu.memory_space<vmem>>, vector<1x8xf32>
    %cst_89 = arith.constant 9.99999974E-6 : f32
    %223 = vector.broadcast %cst_89 : f32 to vector<1x8xf32>
    %224 = arith.addf %221, %223 : vector<1x8xf32>
    %225 = math.rsqrt %224 : vector<1x8xf32>
    %226 = arith.mulf %222, %225 : vector<1x8xf32>
    %c0_90 = arith.constant 0 : index
    %c0_91 = arith.constant 0 : index
    %227 = vector.load %arg7[%c0_90, %c0_91] : memref<1x8xf32, #tpu.memory_space<vmem>>, vector<1x8xf32>
    %228 = arith.mulf %216, %226 : vector<1x8xf32>
    %229 = arith.subf %227, %228 : vector<1x8xf32>
    %230 = tpu.iota {dimensions = array<i32: 1>} : vector<8x64xi32>
    %c8_i32_92 = arith.constant 8 : i32
    %c0_i32_93 = arith.constant 0 : i32
    %231 = arith.cmpi eq, %c8_i32_92, %c0_i32_93 : i32
    %c1_i32_94 = arith.constant 1 : i32
    %232 = arith.select %231, %c1_i32_94, %c8_i32_92 : i32
    %233 = vector.broadcast %232 : i32 to vector<8x64xi32>
    %234 = arith.remsi %230, %233 : vector<8x64xi32>
    %c0_i32_95 = arith.constant 0 : i32
    %235 = vector.broadcast %c0_i32_95 : i32 to vector<8x64xi32>
    %236 = arith.cmpi ne, %234, %235 : vector<8x64xi32>
    %c0_i32_96 = arith.constant 0 : i32
    %237 = vector.broadcast %c0_i32_96 : i32 to vector<8x64xi32>
    %238 = arith.cmpi slt, %234, %237 : vector<8x64xi32>
    %c0_i32_97 = arith.constant 0 : i32
    %239 = arith.cmpi slt, %232, %c0_i32_97 : i32
    %240 = vector.broadcast %239 : i1 to vector<8x64xi1>
    %241 = vector.broadcast %240 : vector<8x64xi1> to vector<8x64xi1>
    %242 = arith.xori %238, %241 : vector<8x64xi1>
    %243 = arith.andi %242, %236 : vector<8x64xi1>
    %244 = vector.broadcast %232 : i32 to vector<8x64xi32>
    %245 = arith.addi %234, %244 : vector<8x64xi32>
    %246 = arith.select %243, %245, %234 : vector<8x64xi1>, vector<8x64xi32>
    %247 = tpu.iota {dimensions = array<i32: 0>} : vector<8x64xi32>
    %248 = arith.cmpi eq, %246, %247 : vector<8x64xi32>
    %249 = arith.extui %248 : vector<8x64xi1> to vector<8x64xi32>
    %250 = arith.sitofp %249 : vector<8x64xi32> to vector<8x64xf32>
    %251 = tpu.concatenate %226, %229 in 0 : vector<1x8xf32>, vector<1x8xf32> -> vector<2x8xf32>
    %cst_98 = arith.constant dense<0.000000e+00> : vector<2x64xf32>
    %252 = tpu.matmul %251, %250, %cst_98 {dimension_numbers = #tpu.dot_dimension_numbers<[1], [0], [0], [1], [0, 0, 1, 1], [], []>, precision = #tpu.contract_precision<fp32>} : vector<2x8xf32>, vector<8x64xf32>, vector<2x64xf32> -> vector<2x64xf32>
    %253 = vector.extract_strided_slice %252 {offsets = [0, 0], sizes = [1, 64], strides = [1, 1]} : vector<2x64xf32> to vector<1x64xf32>
    %254 = vector.broadcast %253 : vector<1x64xf32> to vector<16x64xf32>
    %255 = arith.mulf %185, %254 : vector<16x64xf32>
    %256 = vector.extract_strided_slice %252 {offsets = [1, 0], sizes = [1, 64], strides = [1, 1]} : vector<2x64xf32> to vector<1x64xf32>
    %257 = vector.broadcast %256 : vector<1x64xf32> to vector<16x64xf32>
    %258 = arith.addf %255, %257 : vector<16x64xf32>
    %cst_99 = arith.constant 0.000000e+00 : f32
    %259 = vector.broadcast %cst_99 : f32 to vector<16x64xf32>
    %260 = arith.maximumf %258, %259 : vector<16x64xf32>
    %261 = arith.truncf %260 : vector<16x64xf32> to vector<16x64xbf16>
    %c0_100 = arith.constant 0 : index
    %c0_101 = arith.constant 0 : index
    %262 = vector.load %arg3[%c0_100, %c0_101] : memref<64x128xbf16, #tpu.memory_space<vmem>>, vector<64x128xbf16>
    %cst_102 = arith.constant dense<0.000000e+00> : vector<16x128xf32>
    %263 = tpu.matmul %261, %262, %cst_102 {dimension_numbers = #tpu.dot_dimension_numbers<[1], [0], [0], [1], [0, 0, 1, 1], [], []>} : vector<16x64xbf16>, vector<64x128xbf16>, vector<16x128xf32> -> vector<16x128xf32>
    %cst_103 = arith.constant dense<0.000000e+00> : vector<128xf32>
    %264 = vector.multi_reduction <add>, %263, %cst_103 [0] : vector<16x128xf32> to vector<128xf32>
    %265 = vector.shape_cast %264 : vector<128xf32> to vector<1x128xf32>
    %266 = arith.mulf %263, %263 : vector<16x128xf32>
    %cst_104 = arith.constant dense<0.000000e+00> : vector<128xf32>
    %267 = vector.multi_reduction <add>, %266, %cst_104 [0] : vector<16x128xf32> to vector<128xf32>
    %268 = vector.shape_cast %267 : vector<128xf32> to vector<1x128xf32>
    %269 = tpu.concatenate %265, %268 in 0 : vector<1x128xf32>, vector<1x128xf32> -> vector<2x128xf32>
    %270 = tpu.iota {dimensions = array<i32: 0>} : vector<128x16xi32>
    %c16_i32 = arith.constant 16 : i32
    %c0_i32_105 = arith.constant 0 : i32
    %271 = arith.cmpi eq, %c16_i32, %c0_i32_105 : i32
    %c1_i32_106 = arith.constant 1 : i32
    %272 = arith.select %271, %c1_i32_106, %c16_i32 : i32
    %273 = vector.broadcast %272 : i32 to vector<128x16xi32>
    %274 = arith.remsi %270, %273 : vector<128x16xi32>
    %c0_i32_107 = arith.constant 0 : i32
    %275 = vector.broadcast %c0_i32_107 : i32 to vector<128x16xi32>
    %276 = arith.cmpi ne, %274, %275 : vector<128x16xi32>
    %c0_i32_108 = arith.constant 0 : i32
    %277 = vector.broadcast %c0_i32_108 : i32 to vector<128x16xi32>
    %278 = arith.cmpi slt, %274, %277 : vector<128x16xi32>
    %c0_i32_109 = arith.constant 0 : i32
    %279 = arith.cmpi slt, %272, %c0_i32_109 : i32
    %280 = vector.broadcast %279 : i1 to vector<128x16xi1>
    %281 = vector.broadcast %280 : vector<128x16xi1> to vector<128x16xi1>
    %282 = arith.xori %278, %281 : vector<128x16xi1>
    %283 = arith.andi %282, %276 : vector<128x16xi1>
    %284 = vector.broadcast %272 : i32 to vector<128x16xi32>
    %285 = arith.addi %274, %284 : vector<128x16xi32>
    %286 = arith.select %283, %285, %274 : vector<128x16xi1>, vector<128x16xi32>
    %287 = tpu.iota {dimensions = array<i32: 1>} : vector<128x16xi32>
    %288 = arith.cmpi eq, %286, %287 : vector<128x16xi32>
    %289 = arith.extui %288 : vector<128x16xi1> to vector<128x16xi32>
    %290 = arith.sitofp %289 : vector<128x16xi32> to vector<128x16xf32>
    %cst_110 = arith.constant dense<0.000000e+00> : vector<2x16xf32>
    %291 = tpu.matmul %269, %290, %cst_110 {dimension_numbers = #tpu.dot_dimension_numbers<[1], [0], [0], [1], [0, 0, 1, 1], [], []>, precision = #tpu.contract_precision<fp32>} : vector<2x128xf32>, vector<128x16xf32>, vector<2x16xf32> -> vector<2x16xf32>
    %292 = vector.extract_strided_slice %291 {offsets = [0, 0], sizes = [1, 16], strides = [1, 1]} : vector<2x16xf32> to vector<1x16xf32>
    %cst_111 = arith.constant 1.280000e+02 : f32
    %293 = vector.broadcast %cst_111 : f32 to vector<1x16xf32>
    %294 = arith.divf %292, %293 : vector<1x16xf32>
    %295 = vector.extract_strided_slice %291 {offsets = [1, 0], sizes = [1, 16], strides = [1, 1]} : vector<2x16xf32> to vector<1x16xf32>
    %cst_112 = arith.constant 1.280000e+02 : f32
    %296 = vector.broadcast %cst_112 : f32 to vector<1x16xf32>
    %297 = arith.divf %295, %296 : vector<1x16xf32>
    %298 = arith.mulf %294, %294 : vector<1x16xf32>
    %299 = arith.subf %297, %298 : vector<1x16xf32>
    %c0_113 = arith.constant 0 : index
    %c0_114 = arith.constant 0 : index
    %300 = vector.load %arg8[%c0_113, %c0_114] : memref<1x16xf32, #tpu.memory_space<vmem>>, vector<1x16xf32>
    %cst_115 = arith.constant 9.99999974E-6 : f32
    %301 = vector.broadcast %cst_115 : f32 to vector<1x16xf32>
    %302 = arith.addf %299, %301 : vector<1x16xf32>
    %303 = math.rsqrt %302 : vector<1x16xf32>
    %304 = arith.mulf %300, %303 : vector<1x16xf32>
    %c0_116 = arith.constant 0 : index
    %c0_117 = arith.constant 0 : index
    %305 = vector.load %arg9[%c0_116, %c0_117] : memref<1x16xf32, #tpu.memory_space<vmem>>, vector<1x16xf32>
    %306 = arith.mulf %294, %304 : vector<1x16xf32>
    %307 = arith.subf %305, %306 : vector<1x16xf32>
    %308 = tpu.iota {dimensions = array<i32: 1>} : vector<16x128xi32>
    %c16_i32_118 = arith.constant 16 : i32
    %c0_i32_119 = arith.constant 0 : i32
    %309 = arith.cmpi eq, %c16_i32_118, %c0_i32_119 : i32
    %c1_i32_120 = arith.constant 1 : i32
    %310 = arith.select %309, %c1_i32_120, %c16_i32_118 : i32
    %311 = vector.broadcast %310 : i32 to vector<16x128xi32>
    %312 = arith.remsi %308, %311 : vector<16x128xi32>
    %c0_i32_121 = arith.constant 0 : i32
    %313 = vector.broadcast %c0_i32_121 : i32 to vector<16x128xi32>
    %314 = arith.cmpi ne, %312, %313 : vector<16x128xi32>
    %c0_i32_122 = arith.constant 0 : i32
    %315 = vector.broadcast %c0_i32_122 : i32 to vector<16x128xi32>
    %316 = arith.cmpi slt, %312, %315 : vector<16x128xi32>
    %c0_i32_123 = arith.constant 0 : i32
    %317 = arith.cmpi slt, %310, %c0_i32_123 : i32
    %318 = vector.broadcast %317 : i1 to vector<16x128xi1>
    %319 = vector.broadcast %318 : vector<16x128xi1> to vector<16x128xi1>
    %320 = arith.xori %316, %319 : vector<16x128xi1>
    %321 = arith.andi %320, %314 : vector<16x128xi1>
    %322 = vector.broadcast %310 : i32 to vector<16x128xi32>
    %323 = arith.addi %312, %322 : vector<16x128xi32>
    %324 = arith.select %321, %323, %312 : vector<16x128xi1>, vector<16x128xi32>
    %325 = tpu.iota {dimensions = array<i32: 0>} : vector<16x128xi32>
    %326 = arith.cmpi eq, %324, %325 : vector<16x128xi32>
    %327 = arith.extui %326 : vector<16x128xi1> to vector<16x128xi32>
    %328 = arith.sitofp %327 : vector<16x128xi32> to vector<16x128xf32>
    %329 = tpu.concatenate %304, %307 in 0 : vector<1x16xf32>, vector<1x16xf32> -> vector<2x16xf32>
    %cst_124 = arith.constant dense<0.000000e+00> : vector<2x128xf32>
    %330 = tpu.matmul %329, %328, %cst_124 {dimension_numbers = #tpu.dot_dimension_numbers<[1], [0], [0], [1], [0, 0, 1, 1], [], []>, precision = #tpu.contract_precision<fp32>} : vector<2x16xf32>, vector<16x128xf32>, vector<2x128xf32> -> vector<2x128xf32>
    %331 = vector.extract_strided_slice %330 {offsets = [0, 0], sizes = [1, 128], strides = [1, 1]} : vector<2x128xf32> to vector<1x128xf32>
    %332 = vector.broadcast %331 : vector<1x128xf32> to vector<16x128xf32>
    %333 = arith.mulf %263, %332 : vector<16x128xf32>
    %334 = vector.extract_strided_slice %330 {offsets = [1, 0], sizes = [1, 128], strides = [1, 1]} : vector<2x128xf32> to vector<1x128xf32>
    %335 = vector.broadcast %334 : vector<1x128xf32> to vector<16x128xf32>
    %336 = arith.addf %333, %335 : vector<16x128xf32>
    %337 = arith.addf %336, %0 : vector<16x128xf32>
    %cst_125 = arith.constant 0.000000e+00 : f32
    %338 = vector.broadcast %cst_125 : f32 to vector<16x128xf32>
    %339 = arith.maximumf %337, %338 : vector<16x128xf32>
    %c0_126 = arith.constant 0 : index
    %c0_127 = arith.constant 0 : index
    %340 = vector.load %arg10[%c0_126, %c0_127] : memref<16x128xf32, #tpu.memory_space<vmem>>, vector<16x128xf32>
    tpu.vector_store %arg10[%c0_126, %c0_127], %339 {strides = array<i32>} : memref<16x128xf32, #tpu.memory_space<vmem>>, vector<16x128xf32>,
    return
  }
}

</mosaic_0001>

<bundles_post_ra>
// kernel: tpu_custom_call.1
= control target key start
LH: loop header
LB: loop body
LE: loop exit
PB: predicated region body
PF: predicated region fallthrough
CT: control target
= control target key end

     0   :  { %15 = vsyncpa [#allocation3], 0  ;;  %s7717_s0 = inlined_call_operand.vmem [shape: f32[16,128], index: 0, kind: input, shape index: {}]   ;;  %s7718_s1 = inlined_call_operand.vmem [shape: bf16[128,64], index: 1, kind: input, shape index: {}]   ;;  %s7719_s2 = inlined_call_operand.hbm [shape: bf16[9,64,64], index: 2, kind: input, shape index: {}]   ;;  %s7720_s3 = inlined_call_operand.vmem [shape: bf16[64,128], index: 3, kind: input, shape index: {}]   ;;  %s7721_s4 = inlined_call_operand.vmem [shape: f32[1,8], index: 4, kind: input, shape index: {}]   ;;  %s7722_s5 = inlined_call_operand.vmem [shape: f32[1,8], index: 5, kind: input, shape index: {}]   ;;  %s7723_s6 = inlined_call_operand.vmem [shape: f32[1,8], index: 6, kind: input, shape index: {}]   ;;  %s7724_s7 = inlined_call_operand.vmem [shape: f32[1,8], index: 7, kind: input, shape index: {}]   ;;  %s7725_s8 = inlined_call_operand.vmem [shape: f32[1,16], index: 8, kind: input, shape index: {}]   ;;  %s7726_s9 = inlined_call_operand.vmem [shape: f32[1,16], index: 9, kind: input, shape index: {}]   ;;  %s7727_s10 = inlined_call_operand.hbm [shape: f32[16,128], index: 10, kind: output, shape index: {}]  }
   0x1   :  { %16 = vsyncpa [#allocation4], 0  ;;  %s6459_s13 = smov [#allocation2]   ;;  %s6411_s17 = scalar_lea.hbm %s7719_s2, 4608 }
   0x2   :  { %s26_s14 = sshll.u32 %s6459_s13, 4  ;;  %p6412_p0 = scmp.ne.s32.totalorder %s7719_s2, %s6411_s17  ;;  %s27_s14 = int_to_ptr.vmem [resolvable:$true] %s26_s14 }
   0x3   :  { %p6415_p1 = scmp.lt.u32.totalorder %s6411_s17, %s7719_s2 }
   0x5   :  { %p6417_p2 = pnand %p6415_p1, %p6412_p0 }
   0x7   :  { %6420 = shalt.err (!%p6417_p2)
}
   0x8   :  { %s6421_s22 = scalar_lea.vmem %s27_s14, 4608  ;;  %p6426_p4 = scmp.lt.s32.totalorder %s27_s14, %s27_s14 }
   0x9   :  { %p6422_p3 = scmp.ne.s32.totalorder %s27_s14, %s6421_s22  ;;  %p6427_p5 = scmp.lt.s32.totalorder %s6421_s22, %s6421_s22 }
   0xb   :  { %p6428_p6 = por %p6427_p5, %p6426_p4 }
   0xd   :  { %p6429_p7 = pnand %p6428_p6, %p6422_p3 }
   0xf   :  { %6432 = shalt.err (!%p6429_p7)
}
  0x10   :  { %s6460_s23 = smov 64   ;;  %s6461_s24 = smov 4  }
  0x11   :  { %32 = dma.hbm_to_vmem [thread:$0]  %s7719_s2, 4608, %s27_s14, [#allocation3], %s6460_s23, %s6460_s23, %s6461_s24  }
  0x12   :  { %6455 = dma.done.wait [#allocation3], 4608  }
  0x13   :  { %6456 = vsyncadd [#allocation3], 4294962688  ;;  %v6462_v0 = vmov 0.0   ;;  %vm7729_vm0 = vmmov 0   ;;  %v6355_v1 = vld [vmem:[%s7718_s1] sm:$0xff]   ;;  %v6356_v2 = vld [vmem:[%s7718_s1 + $0x8] sm:$0xff]   ;;  %v184_v12 = vlaneseq }
  0x14   :  { %5265 = vmatprep.subr.bf16.mxu0 %v6462_v0  ;;  %5281 = vmatprep.mubr.msk.bf16.mxu0 %vm7729_vm0, %v6462_v0  ;;  %v6357_v3 = vld [vmem:[%s7718_s1 + $0x10] sm:$0xff]   ;;  %v6358_v4 = vld [vmem:[%s7718_s1 + $0x18] sm:$0xff]   ;;  %v6359_v5 = vld [vmem:[%s7718_s1 + $0x20] sm:$0xff]   ;;  %v6464_v51 = vmov 0.0|0.0   ;;  %vm7731_vm13 = vcmask 523264   ;;  %vm182_vm14 = vcmask 1040384  }
  0x15   :  { %5320 = vmatprep.mubr.msk.f32.mxu1 %vm7729_vm0, %v6462_v0  ;;  %5266 = vmatpush3.bf16.msra.mxu0 %v6355_v1  ;;  %v6360_v6 = vld [vmem:[%s7718_s1 + $0x28] sm:$0xff]   ;;  %v6361_v7 = vld [vmem:[%s7718_s1 + $0x30] sm:$0xff]   ;;  %v6362_v8 = vld [vmem:[%s7718_s1 + $0x38] sm:$0xff]   ;;  %v6584_v13 = vshrl.u32 %v184_v12, 7  ;;  %v6595_v17 = vand.u32 127, %v184_v12 }
  0x16   :  { %5267 = vmatprep.subr.bf16.mxu0 %v6462_v0  ;;  %v53_v9 = vld [vmem:[%s7717_s0] sm:$0xff]  ;;  %v54_v10 = vld [vmem:[%s7717_s0 + $0x8] sm:$0xff]  ;;  %5957 = vmatprep.subr.bf16.mxu1 %v6464_v51 }
  0x17   :  { %v55_v11 = vpack.c.bf16 %v54_v10, %v53_v9  ;;  %v6587_v14 = vadd.s32 8, %v6584_v13  ;;  %v6590_v15 = vand.u32 7, %v6584_v13  ;;  %v6602_v18 = vadd.s32 16, %v6584_v13 }
  0x18   :  { %v6605_v19 = vadd.s32 24, %v6584_v13  ;;  %v6637_v31 = vadd.s32 32, %v6584_v13  ;;  %v6640_v32 = vadd.s32 40, %v6584_v13  ;;  %v6659_v43 = vadd.s32 48, %v6584_v13 }
  0x19   :  { %5268 = vmatpush3.bf16.msra.mxu0 %v6356_v2  ;;  %v6593_v16 = vand.u32 7, %v6587_v14  ;;  %vm291_vm1 = vcmp.eq.s32.totalorder %v6590_v15, %v6595_v17  ;;  %v211_v24 = vand.u32 7, %v6602_v18  ;;  %v6673_v47 = vadd.s32 56, %v6584_v13 }
  0x1a   :  { %5269 = vmatprep.subr.bf16.mxu0 %v6462_v0  ;;  %v4767_v20 = vsel %vm291_vm1, 1.0, %v6462_v0  ;;  %v218_v25 = vand.u32 7, %v6605_v19  ;;  %v225_v38 = vand.u32 7, %v6637_v31  ;;  %v232_v39 = vand.u32 7, %v6640_v32 }
  0x1b   :  { %vm292_vm2 = vcmp.eq.s32.totalorder %v6593_v16, %v6595_v17  ;;  %v6615_v22 = vsub.f32 %v4767_v20, %v4767_v20  ;;  %vm6624_vm3 = vcmp.eq.s32.totalorder %v211_v24, %v6595_v17  ;;  %v239_v55 = vand.u32 7, %v6659_v43 }
  0x1c   :  { %v4768_v21 = vsel %vm292_vm2, 1.0, %v6462_v0  ;;  %vm6629_vm4 = vcmp.eq.s32.totalorder %v218_v25, %v6595_v17  ;;  %v4769_v30 = vsel %vm6624_vm3, 1.0, %v6462_v0  ;;  %vm6663_vm5 = vcmp.eq.s32.totalorder %v225_v38, %v6595_v17  ;;  %vm6723_vm9 = vmpackc.low %vm292_vm2, %vm291_vm1 }
  0x1d   :  { %5270 = vmatpush3.bf16.msra.mxu0 %v6357_v3  ;;  %v6617_v23 = vsub.f32 %v4768_v21, %v4768_v21  ;;  %v404_v26 = vand.u32 4294901760, %v6615_v22  ;;  %v4770_v35 = vsel %vm6629_vm4, 1.0, %v6462_v0  ;;  %v6651_v36 = vsub.f32 %v4769_v30, %v4769_v30  ;;  %vm6736_vm10 = vmpackc.low %vm6629_vm4, %vm6624_vm3 }
  0x1e   :  { %5271 = vmatprep.subr.bf16.mxu0 %v6462_v0  ;;  %v6653_v37 = vsub.f32 %v4770_v35, %v4770_v35  ;;  %vm6668_vm6 = vcmp.eq.s32.totalorder %v232_v39, %v6595_v17  ;;  %v4771_v50 = vsel %vm6663_vm5, 1.0, %v6462_v0  ;;  %v246_v58 = vand.u32 7, %v6673_v47 }
  0x1f   :  { %v411_v27 = vand.u32 4294901760, %v6617_v23  ;;  %v405_v33 = vsub.f32 %v6615_v22, %v404_v26  ;;  %v418_v42 = vand.u32 4294901760, %v6651_v36  ;;  %v4772_v53 = vsel %vm6668_vm6, 1.0, %v6462_v0  ;;  %vm6757_vm11 = vmpackc.low %vm6668_vm6, %vm6663_vm5 }
  0x20   :  { %v425_v44 = vand.u32 4294901760, %v6653_v37  ;;  %v431_v54 = vsub.f32 %v4771_v50, %v4771_v50  ;;  %v438_v57 = vsub.f32 %v4772_v53, %v4772_v53  ;;  %vm6696_vm7 = vcmp.eq.s32.totalorder %v239_v55, %v6595_v17 }
  0x21   :  { %5272 = vmatpush3.bf16.msra.mxu0 %v6358_v4  ;;  %v412_v34 = vsub.f32 %v6617_v23, %v411_v27  ;;  %v406_v40 = vand.u32 4294901760, %v405_v33  ;;  %v419_v49 = vsub.f32 %v6651_v36, %v418_v42  ;;  %vm6701_vm8 = vcmp.eq.s32.totalorder %v246_v58, %v6595_v17 }
  0x22   :  { %5273 = vmatprep.subr.bf16.mxu0 %v6462_v0  ;;  %v426_v52 = vsub.f32 %v6653_v37, %v425_v44  ;;  %v432_v60 = vand.u32 4294901760, %v431_v54  ;;  %v439_v62 = vand.u32 4294901760, %v438_v57  ;;  %v4773_v1 = vsel %vm6696_vm7, 1.0, %v6462_v0  ;;  %vm6773_vm12 = vmpackc.low %vm6701_vm8, %vm6696_vm7 }
  0x23   :  { %v413_v41 = vand.u32 4294901760, %v412_v34  ;;  %v420_v56 = vand.u32 4294901760, %v419_v49  ;;  %v4774_v4 = vsel %vm6701_vm8, 1.0, %v6462_v0  ;;  %v6465_v25 = vmov 1.0|1.0  }
  0x24   :  { %v427_v59 = vand.u32 4294901760, %v426_v52  ;;  %v433_v3 = vsub.f32 %v431_v54, %v432_v60  ;;  %v6750_v28 = vpack.c.bf16 %v6617_v23, %v6615_v22  ;;  %v6766_v38 = vpack.c.bf16 %v6653_v37, %v6651_v36 }
  0x25   :  { %5274 = vmatpush3.bf16.msra.mxu0 %v6359_v5  ;;  %v6675_v48 = vpack.c.bf16 %v413_v41, %v406_v40  ;;  %v445_v5 = vsub.f32 %v4773_v1, %v4773_v1  ;;  %v6780_v40 = vpack.c.bf16 %v438_v57, %v431_v54  ;;  %v6789_v45 = vpack.c.bf16 %v411_v27, %v404_v26 }
  0x26   :  { %5275 = vmatprep.subr.bf16.mxu0 %v6462_v0  ;;  %v6708_v2 = vpack.c.bf16 %v427_v59, %v420_v56  ;;  %v6795_v46 = vpack.c.bf16 %v425_v44, %v418_v42  ;;  %v6797_v49 = vpack.c.bf16 %v439_v62, %v432_v60  ;;  %vm7728_vm1 = vcmask 64512  }
  0x27   :  { %5959 = vmatpush3.bf16.msra.mxu1 %v6675_v48  ;;  %v446_v9 = vand.u32 4294901760, %v445_v5 }
  0x28   :  { %5960 = vmatprep.subr.bf16.mxu1 %v6464_v51 }
  0x29   :  { %5276 = vmatpush3.bf16.msra.mxu0 %v6360_v6  ;;  %v440_v6 = vsub.f32 %v438_v57, %v439_v62  ;;  %v447_v12 = vsub.f32 %v445_v5, %v446_v9 }
  0x2a   :  { %5277 = vmatprep.subr.bf16.mxu0 %v6462_v0 }
  0x2b   :  { %5962 = vmatpush3.bf16.msra.mxu1 %v6708_v2  ;;  %v441_v10 = vand.u32 4294901760, %v440_v6  ;;  %v448_v30 = vand.u32 4294901760, %v447_v12 }
  0x2c   :  { %5963 = vmatprep.subr.bf16.mxu1 %v6464_v51 }
  0x2d   :  { %5278 = vmatpush3.bf16.msra.mxu0 %v6361_v7  ;;  %v452_v7 = vsub.f32 %v4774_v4, %v4774_v4 }
  0x2e   :  { %5279 = vmatprep.subr.bf16.mxu0 %v6462_v0 }
  0x2f   :  { %v6783_v41 = vpack.c.bf16 %v452_v7, %v445_v5 }
  0x31   :  { %5280 = vmatpush3.bf16.msra.mxu0 %v6362_v8  ;;  %v434_v8 = vand.u32 4294901760, %v433_v3 }
  0x32   :  { %5945 = vmatprep.subr.bf16.mxu0 %v6464_v51 }
  0x33   :  { %v6715_v20 = vpack.c.bf16 %v441_v10, %v434_v8 }
  0x34   :  { %5282 = vmatmul.mubr.bf16.vlgmr.msra.gmra.mrb[0].mxu0 %v55_v11  ;;  %v453_v11 = vand.u32 4294901760, %v452_v7 }
  0x35   :  { %5301 = vmatprep.mubr.msk.f32.mxu0 %vm7729_vm0, %v6462_v0  ;;  %5947 = vmatpush3.bf16.msk.msra.mxu0 %vm6723_vm9, %v6465_v25 }
  0x36   :  { %v454_v24 = vsub.f32 %v452_v7, %v453_v11  ;;  %5965 = vmatpush3.bf16.msra.mxu1 %v6715_v20  ;;  %5948 = vmatprep.subr.bf16.mxu0 %v6464_v51  ;;  %v6799_v50 = vpack.c.bf16 %v453_v11, %v446_v9 }
  0x37   :  { %5966 = vmatprep.subr.bf16.mxu1 %v6464_v51 }
  0x38   :  { %v455_v33 = vand.u32 4294901760, %v454_v24  ;;  %v890_v24 = vand.u32 7, %v6595_v17 }
  0x39   :  { %5950 = vmatpush3.bf16.msk.msra.mxu0 %vm6736_vm10, %v6465_v25 }
  0x3a   :  { %v6741_v35 = vpack.c.bf16 %v455_v33, %v448_v30  ;;  %5951 = vmatprep.subr.bf16.mxu0 %v6464_v51  ;;  %vm6895_vm15 = vcmp.eq.s32.totalorder %v890_v24, %v6584_v13  ;;  %v6466_v33 = vmov 1.0   ;;  %v6401_v30 = vld [vmem:[%s7720_s3 + $0x10] sm:$0xff]  }
  0x3c   :  { %5968 = vmatpush3.bf16.msra.mxu1 %v6741_v35 }
  0x3d   :  { %5969 = vmatprep.subr.bf16.mxu1 %v6464_v51  ;;  %5953 = vmatpush3.bf16.msk.msra.mxu0 %vm6757_vm11, %v6465_v25 }
  0x3e   :  { %5954 = vmatprep.subr.bf16.mxu0 %v6464_v51 }
  0x41   :  { %5956 = vmatpush3.bf16.msk.msra.mxu0 %vm6773_vm12, %v6465_v25 }
  0x42   :  { %5399 = vmatprep.subr.mxu0 %v6462_v0 }
 0x107   :  { %v6801_v52 = vpop.f32.mrb[0].mxu0 }
 0x108   :  { %v171_v22 = vmul.f32 %v6801_v52, %v6801_v52  ;;  %v5283_v53 = vpop.f32.mrb[1].mxu0  ;;  %v162_v26 = vsel %vm7731_vm13, %v6801_v52, 0.0 }
 0x109   :  { %v6805_v23 = vpop.f32.mrb[2].mxu0 }
 0x10a   :  { %v163_v27 = vsel %vm7731_vm13, %v6805_v23, 0.0  ;;  %v172_v36 = vmul.f32 %v6805_v23, %v6805_v23  ;;  %v5284_v37 = vpop.f32.mrb[3].mxu0  ;;  %v173_v44 = vsel %vm7731_vm13, %v171_v22, 0.0 }
 0x10b   :  { %v164_v42 = vadd.f32 %v163_v27, %v162_v26 }
 0x10c   :  { %v174_v54 = vsel %vm7731_vm13, %v172_v36, 0.0 }
 0x10d   :  { %v165_v55 = vrot.slane %v164_v42, 4  ;;  %v175_v56 = vadd.f32 %v174_v54, %v173_v44 }
 0x10f   :  { %v166_v57 = vadd.f32 %v165_v55, %v164_v42  ;;  %v176_v58 = vrot.slane %v175_v56, 4 }
 0x111   :  { %v167_v59 = vrot.slane %v166_v57, 2  ;;  %v177_v60 = vadd.f32 %v176_v58, %v175_v56  ;;  %v6467_v56 = vmov 1966171168  }
 0x113   :  { %v168_v61 = vadd.f32 %v167_v59, %v166_v57  ;;  %v178_v62 = vrot.slane %v177_v60, 2  ;;  %v867_v57 = vunpack.c.l.s4 %v6467_v56  ;;  %v6366_v56 = vld [vmem:[#allocation2 + $0x38] sm:$0xff]  }
 0x115   :  { %v169_v63 = vrot.slane %v168_v61, 1  ;;  %v179_v1 = vadd.f32 %v178_v62, %v177_v60  ;;  %v868_v58 = vunpack.c.0.s8 %v867_v57  ;;  %v1413_v57 = vadd.s32 1, %v6590_v15 }
 0x117   :  { %v180_v3 = vrot.slane %v179_v1, 1  ;;  %v170_v4 = vadd.f32 %v169_v63, %v168_v61  ;;  %v6904_v59 = vsub.s32 %v868_v58, %v6584_v13  ;;  %v862_v63 = vld [vmem:[%s7721_s4] sm:$0x1]  ;;  %v1414_v58 = vadd.s32 1, %v6593_v16  ;;  %s6469_s4 = smov 8  }
 0x118   :  { %vm1417_vm2 = vcmp.lt.s32.totalorder %v1413_v57, 8 }
 0x119   :  { %v181_v5 = vadd.f32 %v180_v3, %v179_v1  ;;  %vm1418_vm3 = vcmp.lt.s32.totalorder %v1414_v58, 8  ;;  %vm1425_vm5 = vmpackc.low %vm1417_vm2, %vm1417_vm2  ;;  %vm1409_vm2 = vcmask 1047552  }
 0x11a   :  { %vm1426_vm7 = vmpackc.low %vm1418_vm3, %vm1418_vm3 }
 0x11b   :  { %v183_v6 = vsel %vm182_vm14, %v170_v4, %v181_v5  ;;  %v883_v4 = vld [vmem:[%s7722_s5] sm:$0x1]  ;;  %s6470_s5 = smov 120  }
 0x11c   :  { %v316_v7 = vsel %vm7731_vm13, %v183_v6, 0  ;;  %v6915_v6 = vsub.s32 0, %v6584_v13  ;;  %vm1382_vm13 = vsmask.f32 256 }
 0x11d   :  { %v391_v8 = vand.u32 4294901760, %v316_v7 }
 0x11f   :  { %v392_v9 = vsub.f32 %v316_v7, %v391_v8  ;;  %5321 = vmatmul.mubr.f32.vlgmr.msra.gmra.mrb[0].mxu1 %v391_v8  ;;  %v4799_v7 = vsel %vm6895_vm15, 1.0, %v6462_v0 }
 0x120   :  { %5971 = vmatpush3.bf16.msra.mxu1 %v6750_v28  ;;  %5339 = vmatprep.mubr.msk.f32.mxu1 %vm7729_vm0, %v6462_v0 }
 0x121   :  { %5972 = vmatprep.subr.bf16.mxu1 %v6464_v51  ;;  %v393_v10 = vand.u32 4294901760, %v392_v9 }
 0x123   :  { %v394_v11 = vsub.f32 %v392_v9, %v393_v10 }
 0x124   :  { %5974 = vmatpush3.bf16.msra.mxu1 %v6766_v38 }
 0x125   :  { %5975 = vmatprep.subr.bf16.mxu1 %v6464_v51  ;;  %v395_v12 = vand.u32 4294901760, %v394_v11 }
 0x127   :  { %5302 = vmatmul.mubr.f32.vlgmr.msra.gmra.mrb[4].mxu0 %v395_v12 }
 0x128   :  { %5977 = vmatpush3.bf16.msra.mxu1 %v6780_v40  ;;  %5401 = vmatprep.mubr.msk.f32.mxu0 %vm7729_vm0, %v6462_v0 }
 0x129   :  { %5978 = vmatprep.subr.bf16.mxu1 %v6464_v51  ;;  %5400 = vmatpush3.msk.msra.mxu0 %vm6895_vm15, %v6466_v33 }
 0x12a   :  { %5404 = vmatprep.subr.mxu0 %v6462_v0 }
 0x12c   :  { %5980 = vmatpush3.bf16.msra.mxu1 %v6783_v41 }
 0x12d   :  { %5981 = vmatprep.subr.bf16.mxu1 %v6464_v51 }
 0x12f   :  { %5340 = vmatmul.mubr.f32.vlgmr.msra.gmra.mrb[0].mxu1 %v392_v9  ;;  %v6920_v9 = vsub.f32 %v4799_v7, %v4799_v7 }
 0x130   :  { %5983 = vmatpush3.bf16.msk.msra.mxu1 %vm6723_vm9, %v6465_v25  ;;  %5358 = vmatprep.mubr.msk.f32.mxu1 %vm7729_vm0, %v6462_v0 }
 0x131   :  { %5984 = vmatprep.subr.bf16.mxu1 %v6464_v51  ;;  %v6926_v24 = vand.u32 4294901760, %v6920_v9 }
 0x134   :  { %5986 = vmatpush3.bf16.msk.msra.mxu1 %vm6736_vm10, %v6465_v25 }
 0x135   :  { %5987 = vmatprep.subr.bf16.mxu1 %v6464_v51 }
 0x138   :  { %5989 = vmatpush3.bf16.msk.msra.mxu1 %vm6757_vm11, %v6465_v25 }
 0x139   :  { %5990 = vmatprep.subr.bf16.mxu1 %v6464_v51 }
 0x13c   :  { %5992 = vmatpush3.bf16.msk.msra.mxu1 %vm6773_vm12, %v6465_v25 }
 0x13d   :  { %5993 = vmatprep.subr.bf16.mxu1 %v6464_v51 }
 0x13f   :  { %5359 = vmatmul.mubr.f32.vlgmr.msra.gmra.mrb[0].mxu1 %v393_v10 }
 0x140   :  { %5995 = vmatpush3.bf16.msra.mxu1 %v6789_v45  ;;  %5377 = vmatprep.mubr.msk.f32.mxu1 %vm7729_vm0, %v6462_v0 }
 0x141   :  { %5996 = vmatprep.subr.bf16.mxu1 %v6464_v51 }
 0x144   :  { %5998 = vmatpush3.bf16.msra.mxu1 %v6795_v46 }
 0x145   :  { %5999 = vmatprep.subr.bf16.mxu1 %v6464_v51 }
 0x148   :  { %6001 = vmatpush3.bf16.msra.mxu1 %v6797_v49 }
 0x149   :  { %6002 = vmatprep.subr.bf16.mxu1 %v6464_v51 }
 0x14c   :  { %6004 = vmatpush3.bf16.msra.mxu1 %v6799_v50 }
 0x14d   :  { %6005 = vmatprep.subr.bf16.mxu1 %v6464_v51 }
 0x14f   :  { %5378 = vmatmul.mubr.f32.vlgmr.msra.gmra.mrb[0].mxu1 %v391_v8 }
 0x150   :  { %6007 = vmatpush3.bf16.msk.msra.mxu1 %vm6723_vm9, %v6465_v25  ;;  %5396 = vmatprep.mubr.msk.f32.mxu1 %vm7729_vm0, %v6462_v0 }
 0x151   :  { %6008 = vmatprep.subr.bf16.mxu1 %v6464_v51 }
 0x154   :  { %6010 = vmatpush3.bf16.msk.msra.mxu1 %vm6736_vm10, %v6465_v25 }
 0x155   :  { %6011 = vmatprep.subr.bf16.mxu1 %v6464_v51 }
 0x158   :  { %6013 = vmatpush3.bf16.msk.msra.mxu1 %vm6757_vm11, %v6465_v25 }
 0x159   :  { %6014 = vmatprep.subr.bf16.mxu1 %v6464_v51 }
 0x15c   :  { %6016 = vmatpush3.bf16.msk.msra.mxu1 %vm6773_vm12, %v6465_v25 }
 0x15d   :  { %6017 = vmatprep.subr.bf16.mxu1 %v6464_v51 }
 0x15f   :  { %5397 = vmatmul.mubr.f32.vlgmr.msra.gmra.mrb[0].mxu1 %v391_v8 }
 0x160   :  { %6019 = vmatpush3.bf16.msk.msra.mxu1 %vm6723_vm9, %v6465_v25  ;;  %5553 = vmatprep.mubr.msk.f32.mxu1 %vm7729_vm0, %v6462_v0 }
 0x161   :  { %6020 = vmatprep.subr.bf16.mxu1 %v6464_v51 }
 0x164   :  { %6022 = vmatpush3.bf16.msk.msra.mxu1 %vm6736_vm10, %v6465_v25 }
 0x165   :  { %6023 = vmatprep.subr.bf16.mxu1 %v6464_v51 }
 0x168   :  { %6025 = vmatpush3.bf16.msk.msra.mxu1 %vm6757_vm11, %v6465_v25 }
 0x169   :  { %6026 = vmatprep.subr.bf16.mxu1 %v6464_v51 }
 0x16c   :  { %6028 = vmatpush3.bf16.msk.msra.mxu1 %vm6773_vm12, %v6465_v25 }
 0x16d   :  { %6029 = vmatprep.subr.bf16.mxu1 %v6464_v51 }
 0x1fa   :  { %v397_v22 = vpop.f32.mrb[4].mxu0 }
 0x1fb   :  { %v5303_v53 = vpop.f32.mrb[5].mxu0 }
 0x232   :  { %v851_v26 = vpop.f32.mrb[0].mxu1 }
 0x233   :  { %v6251_v27 = vadd.f32 %v851_v26, %v397_v22  ;;  %v5398_v36 = vpop.f32.mrb[1].mxu1  ;;  %v992_v26 = vsub.f32 %v6920_v9, %v6926_v24 }
 0x235   :  { %v856_v37 = vmul.f32 0.0078125, %v6251_v27 }
 0x237   :  { %v857_v42 = vmul.f32 %v856_v37, %v856_v37 }
 0x239   :  { %v859_v44 = vrot.slane %v857_v42, 7 }
 0x23b   :  { %v861_v54 = vsub.f32 %v856_v37, %v859_v44  ;;  %v6363_v44 = vld [vmem:[#allocation2 + $0x20] sm:$0xff]  }
 0x23d   :  { %v863_v55 = vadd.f32 1e-05, %v861_v54  ;;  %v6364_v54 = vld [vmem:[#allocation2 + $0x28] sm:$0xff]  }
 0x23f   :  { %6403 = vrsqrt.f32 %v863_v55  ;;  %v6365_v55 = vld [vmem:[#allocation2 + $0x30] sm:$0xff]  }
 0x249   :  { %v6404_v60 = vpop.eup %6403 }
 0x24a   :  { %v872_v61 = vrot.slane %v6404_v60, %v6904_v59  ;;  %v1385_v60 = vadd.s32 4294967295, %v6590_v15 }
 0x24c   :  { %v873_v62 = vcombine.high %v872_v61, %v872_v61  ;;  %v1386_v61 = vadd.s32 4294967295, %v6593_v16  ;;  %vm1387_vm4 = vcmp.ge.s32.totalorder %v1385_v60, 0  ;;  %v6367_v60 = vld [vmem:[#allocation2] sm:$0xff]  }
 0x24d   :  { %vm1397_vm8 = vmpackc.low %vm1387_vm4, %vm1387_vm4 }
 0x24e   :  { %v880_v1 = vrot.slane %v873_v62, %v6904_v59  ;;  %v6967_v62 = vsub.s32 1, %v6584_v13  ;;  %vm1388_vm6 = vcmp.ge.s32.totalorder %v1386_v61, 0 }
 0x250   :  { %v882_v3 = vmul.f32 %v880_v1, %v862_v63 }
 0x252   :  { %v884_v5 = vmul.f32 %v882_v3, %v856_v37  ;;  %v6930_v37 = vand.u32 4294901760, %v992_v26 }
 0x254   :  { %v885_v8 = vsub.f32 %v883_v4, %v884_v5 }
 0x256   :  { %v905_v10 = vrot.slane %v885_v8, %v6915_v6 }
 0x258   :  { %v907_v11 = vsel %vm182_vm14, %v882_v3, %v905_v10 }
 0x259   :  { %v910_v12 = vsel %vm7728_vm1, %v907_v11, 0  ;;  %vm1398_vm1 = vmpackc.low %vm1388_vm6, %vm1388_vm6  ;;  %v6468_v11 = vmov 0   ;;  %vm7756_vm6 = vcmask 64512  }
 0x25a   :  { %v978_v22 = vand.u32 4294901760, %v910_v12  ;;  %v1400_v26 = vsel %vm1398_vm1, 65537, %v6468_v11  ;;  %vm1383_vm1 = vmand %vm182_vm14, %vm1382_vm13  ;;  %vm7755_vm13 = vmmov 0  }
 0x25c   :  { %v979_v53 = vsub.f32 %v910_v12, %v978_v22  ;;  %v1427_v12 = vsel %vm1425_vm5, 65537, %v6468_v11 }
 0x25e   :  { %v980_v27 = vand.u32 4294901760, %v979_v53 }
 0x260   :  { %v981_v36 = vsub.f32 %v979_v53, %v980_v27 }
 0x262   :  { %v982_v42 = vand.u32 4294901760, %v981_v36 }
 0x264   :  { %5402 = vmatmul.mubr.f32.vlgmr.msra.gmra.mrb[6].mxu0 %v982_v42 }
 0x265   :  { %5405 = vmatpush3.msra.mxu0 %v6930_v37  ;;  %5406 = vmatprep.mubr.msk.f32.mxu0 %vm7729_vm0, %v6462_v0 }
 0x266   :  { %5409 = vmatprep.subr.mxu0 %v6462_v0 }
 0x26c   :  { %5407 = vmatmul.mubr.f32.vlgmr.msra.gmra.mrb[6].mxu0 %v978_v22 }
 0x26d   :  { %5410 = vmatpush3.msra.mxu0 %v6920_v9  ;;  %5411 = vmatprep.mubr.msk.f32.mxu0 %vm7729_vm0, %v6462_v0 }
 0x26e   :  { %5414 = vmatprep.subr.mxu0 %v6462_v0 }
 0x274   :  { %5412 = vmatmul.mubr.f32.vlgmr.msra.gmra.mrb[6].mxu0 %v979_v53  ;;  %v1399_v53 = vsel %vm1397_vm8, 65537, %v6468_v11  ;;  %vm1594_vm8 = vcmask 457728  }
 0x275   :  { %5415 = vmatpush3.msk.msra.mxu0 %vm6895_vm15, %v6466_v33  ;;  %5416 = vmatprep.mubr.msk.f32.mxu0 %vm7729_vm0, %v6462_v0  ;;  %v4803_v42 = vcombine.low %v1399_v53, %v1400_v26  ;;  %v6376_v53 = vld [vmem:[#allocation2 + $0x68] sm:$0xff]   ;;  %v6377_v26 = vld [vmem:[#allocation2 + $0x70] sm:$0xff]  }
 0x276   :  { %5419 = vmatprep.subr.mxu0 %v6462_v0 }
 0x277   :  { %vm1404_vm5 = vcmp.ne.s16.totalorder %v4803_v42, 0 }
 0x27c   :  { %5417 = vmatmul.mubr.f32.vlgmr.msra.gmra.mrb[6].mxu0 %v980_v27 }
 0x27d   :  { %5420 = vmatpush3.msra.mxu0 %v6926_v24  ;;  %5421 = vmatprep.mubr.msk.f32.mxu0 %vm7729_vm0, %v6462_v0 }
 0x27e   :  { %5424 = vmatprep.subr.mxu0 %v6462_v0 }
 0x284   :  { %5422 = vmatmul.mubr.f32.vlgmr.msra.gmra.mrb[6].mxu0 %v978_v22 }
 0x285   :  { %5425 = vmatpush3.msk.msra.mxu0 %vm6895_vm15, %v6466_v33  ;;  %5426 = vmatprep.mubr.msk.f32.mxu0 %vm7729_vm0, %v6462_v0 }
 0x286   :  { %5429 = vmatprep.subr.bf16.mxu0 %v6462_v0 }
 0x28c   :  { %5427 = vmatmul.mubr.f32.vlgmr.msra.gmra.mrb[6].mxu0 %v978_v22  ;;  %v1428_v22 = vsel %vm1426_vm7, 65537, %v6468_v11 }
 0x28d   :  { %5437 = vmatprep.mubr.msk.bf16.mxu0 %vm7729_vm0, %v6462_v0  ;;  %5430 = vmatpush3.bf16.msra.mxu0 %v6363_v44  ;;  %vm1410_vm0 = vsmask.f32 7424  ;;  %v4804_v36 = vcombine.low %v1427_v12, %v1428_v22  ;;  %v6375_v12 = vld [vmem:[#allocation2 + $0x60] sm:$0xff]  }
 0x28e   :  { %5431 = vmatprep.subr.bf16.mxu0 %v6462_v0  ;;  %vm1411_vm3 = vmand %vm1409_vm2, %vm1410_vm0  ;;  %vm7754_vm0 = vcmask 523264  }
 0x28f   :  { %vm1432_vm4 = vcmp.ne.s16.totalorder %v4804_v36, 0  ;;  %vm7757_vm7 = vmmov %vm7754_vm0  ;;  %v6379_v36 = vld [vmem:[#allocation2 + $0x80] sm:$0xff]  }
 0x290   :  { %vm7758_vm2 = vmmov %vm7754_vm0 }
 0x291   :  { %5432 = vmatpush3.bf16.msra.mxu0 %v6364_v54 }
 0x292   :  { %5433 = vmatprep.subr.bf16.mxu0 %v6462_v0 }
 0x295   :  { %5434 = vmatpush3.bf16.msra.mxu0 %v6365_v55 }
 0x296   :  { %5435 = vmatprep.subr.bf16.mxu0 %v6462_v0 }
 0x299   :  { %5436 = vmatpush3.bf16.msra.mxu0 %v6366_v56 }
 0x29a   :  { %5441 = vmatprep.subr.bf16.mxu0 %v6462_v0 }
 0x35f   :  { %v1354_v63 = vpop.f32.mrb[6].mxu0 }
 0x360   :  { %v1361_v1 = vrot.slane %v1354_v63, %v6915_v6  ;;  %v5428_v3 = vpop.f32.mrb[7].mxu0  ;;  %v1367_v15 = vrot.slane %v1354_v63, %v6967_v62 }
 0x361   :  { %v6369_v3 = vld [vmem:[#allocation2 + $0x10] sm:$0xff]  }
 0x362   :  { %v1362_v4 = vmul.f32 %v1361_v1, %v6801_v52  ;;  %v1363_v5 = vmul.f32 %v1361_v1, %v6805_v23  ;;  %v6368_v1 = vld [vmem:[#allocation2 + $0x8] sm:$0xff]  }
 0x364   :  { %v1368_v16 = vadd.f32 %v1367_v15, %v1362_v4  ;;  %v1369_v7 = vadd.f32 %v1367_v15, %v1363_v5  ;;  %v6370_v4 = vld [vmem:[#allocation2 + $0x18] sm:$0xff]   ;;  %v6371_v5 = vld [vmem:[#allocation2 + $0x40] sm:$0xff]  }
 0x366   :  { %v1370_v8 = vmax.f32 %v1368_v16, 0.0  ;;  %v1371_v10 = vmax.f32 %v1369_v7, 0.0  ;;  %v6372_v7 = vld [vmem:[#allocation2 + $0x48] sm:$0xff]  }
 0x368   :  { %v6973_v27 = vpack.c.bf16 %v1371_v10, %v1370_v8  ;;  %v6373_v8 = vld [vmem:[#allocation2 + $0x50] sm:$0xff]   ;;  %v6374_v10 = vld [vmem:[#allocation2 + $0x58] sm:$0xff]  }
 0x36a   :  { %1676 = vrot.lane.b32.xlu1 %v6973_v27, %s6469_s4  ;;  %v1374_v52 = vshrl.u32 %v6973_v27, 16  ;;  %v1377_v23 = vshll.u32 %v6973_v27, 16 }
 0x36c   :  { %v1406_v44 = vrot.slane %v1377_v23, 1  ;;  %v1376_v54 = vrot.slane %v1374_v52, 7 }
 0x36e   :  { %1836 = vrot.lane.b32.xlu1 %v6973_v27, %s6470_s5  ;;  %v1407_v55 = vor.u32 %v1406_v44, %v1374_v52  ;;  %v1379_v56 = vor.u32 %v1377_v23, %v1376_v54  ;;  %v6378_v52 = vld [vmem:[#allocation2 + $0x78] sm:$0xff]   ;;  %v6380_v44 = vld [vmem:[#allocation2 + $0x88] sm:$0xff]   ;;  %v6381_v54 = vld [vmem:[#allocation2 + $0x90] sm:$0xff]  }
 0x370   :  { %v1412_v57 = vsel %vm1411_vm3, %v1407_v55, 0  ;;  %v1384_v58 = vsel %vm1383_vm1, 0, %v1379_v56  ;;  %vm7759_vm3 = vmmov %vm7756_vm6  ;;  %v6382_v55 = vld [vmem:[#allocation2 + $0x98] sm:$0xff]   ;;  %v6383_v56 = vld [vmem:[#allocation2 + $0xa0] sm:$0xff]  }
 0x371   :  { %v6981_v61 = vsel %vm1432_vm4, %v1412_v57, 0  ;;  %v1405_v63 = vsel %vm1404_vm5, %v1384_v58, 0  ;;  %vm7760_vm1 = vmmov %vm7754_vm0  ;;  %v6384_v57 = vld [vmem:[#allocation2 + $0xa8] sm:$0xff]   ;;  %v6385_v58 = vld [vmem:[#allocation2 + $0xb0] sm:$0xff]  }
 0x372   :  { %2080 = vrot.lane.b32.xlu1 %v6981_v61, %s6470_s5  ;;  %1435 = vrot.lane.b32.xlu0 %v1405_v63, %s6469_s4  ;;  %vm7761_vm4 = vmmov %vm7754_vm0 }
 0x373   :  { %5438 = vmatmul.mubr.msk.bf16.vlgmr.msra.gmra.mrb[8].mxu0 %vm7754_vm0, %v1405_v63  ;;  %vm7762_vm5 = vmmov %vm7754_vm0 }
 0x374   :  { %5442 = vmatpush3.bf16.msra.mxu0 %v6367_v60  ;;  %5449 = vmatprep.mubr.msk.bf16.mxu0 %vm7755_vm13, %v6462_v0  ;;  %v6386_v60 = vld [vmem:[#allocation2 + $0xb8] sm:$0xff]   ;;  %vm7763_vm0 = vmmov %vm7759_vm3 }
 0x375   :  { %5443 = vmatprep.subr.bf16.mxu0 %v6462_v0 }
 0x376   :  { %1592 = vrot.lane.b32.xlu0 %v1405_v63, %s6470_s5 }
 0x378   :  { %5444 = vmatpush3.bf16.msra.mxu0 %v6368_v1  ;;  %v6387_v1 = vld [vmem:[#allocation2 + $0xc0] sm:$0xff]  }
 0x379   :  { %5445 = vmatprep.subr.bf16.mxu0 %v6462_v0 }
 0x37a   :  { %1919 = vrot.lane.b32.xlu0 %v6981_v61, %s6469_s4 }
 0x37c   :  { %5446 = vmatpush3.bf16.msra.mxu0 %v6369_v3  ;;  %v6388_v3 = vld [vmem:[#allocation2 + $0xc8] sm:$0xff]  }
 0x37d   :  { %5447 = vmatprep.subr.bf16.mxu0 %v6462_v0 }
 0x380   :  { %5448 = vmatpush3.bf16.msra.mxu0 %v6370_v4  ;;  %v6389_v4 = vld [vmem:[#allocation2 + $0xd0] sm:$0xff]  }
 0x381   :  { %5453 = vmatprep.subr.bf16.mxu0 %v6462_v0 }
 0x3dc   :  { %v1677_v23 = vpop.permute.xlu1 %1676 }
 0x3dd   :  { %v1679_v42 = vsel %vm7759_vm3, 0, %v1677_v23  ;;  %vm7767_vm3 = vmmov %vm7760_vm1 }
 0x3e0   :  { %v1837_v63 = vpop.permute.xlu1 %1836 }
 0x3e4   :  { %v1436_v15 = vpop.permute.xlu0 %1435 }
 0x3e5   :  { %v1439_v16 = vsel %vm7756_vm6, 0, %v1436_v15  ;;  %vm7764_vm6 = vmmov %vm7760_vm1 }
 0x3e6   :  { %5450 = vmatmul.mubr.msk.bf16.vlgmr.msra.gmra.mrb[8].mxu0 %vm7757_vm7, %v1439_v16  ;;  %v6391_v16 = vld [vmem:[#allocation2 + $0xe0] sm:$0xff]   ;;  %vm7765_vm7 = vmmov %vm7760_vm1 }
 0x3e7   :  { %5454 = vmatpush3.bf16.msra.mxu0 %v6371_v5  ;;  %5461 = vmatprep.mubr.msk.bf16.mxu0 %vm7755_vm13, %v6462_v0  ;;  %v6390_v5 = vld [vmem:[#allocation2 + $0xd8] sm:$0xff]  }
 0x3e8   :  { %5455 = vmatprep.subr.bf16.mxu0 %v6462_v0  ;;  %v1593_v11 = vpop.permute.xlu0 %1592 }
 0x3e9   :  { %v1596_v22 = vsel %vm1594_vm8, %v1593_v11, 0  ;;  %v6394_v11 = vld [vmem:[#allocation2 + $0xf8] sm:$0xff]  }
 0x3eb   :  { %5456 = vmatpush3.bf16.msra.mxu0 %v6372_v7 }
 0x3ec   :  { %5457 = vmatprep.subr.bf16.mxu0 %v6462_v0  ;;  %v1920_v15 = vpop.permute.xlu0 %1919 }
 0x3ed   :  { %v1922_v7 = vsel %vm7763_vm0, 0, %v1920_v15 }
 0x3ef   :  { %5458 = vmatpush3.bf16.msra.mxu0 %v6373_v8  ;;  %v6392_v8 = vld [vmem:[#allocation2 + $0xe8] sm:$0xff]  }
 0x3f0   :  { %5459 = vmatprep.subr.bf16.mxu0 %v6462_v0 }
 0x3f3   :  { %5460 = vmatpush3.bf16.msra.mxu0 %v6374_v10  ;;  %v6393_v10 = vld [vmem:[#allocation2 + $0xf0] sm:$0xff]  }
 0x3f4   :  { %5465 = vmatprep.subr.bf16.mxu0 %v6462_v0 }
 0x3f6   :  { %5462 = vmatmul.mubr.msk.bf16.vlgmr.msra.gmra.mrb[8].mxu0 %vm7758_vm2, %v1596_v22  ;;  %v6396_v22 = vld [vmem:[#allocation2 + $0x108] sm:$0xff]   ;;  %vm7766_vm2 = vmmov %vm7760_vm1 }
 0x3f7   :  { %5466 = vmatpush3.bf16.msra.mxu0 %v6375_v12  ;;  %5473 = vmatprep.mubr.msk.bf16.mxu0 %vm7755_vm13, %v6462_v0  ;;  %v6395_v12 = vld [vmem:[#allocation2 + $0x100] sm:$0xff]  }
 0x3f8   :  { %5467 = vmatprep.subr.bf16.mxu0 %v6462_v0 }
 0x3fb   :  { %5468 = vmatpush3.bf16.msra.mxu0 %v6376_v53  ;;  %v6397_v53 = vld [vmem:[#allocation2 + $0x110] sm:$0xff]  }
 0x3fc   :  { %5469 = vmatprep.subr.bf16.mxu0 %v6462_v0 }
 0x3ff   :  { %5470 = vmatpush3.bf16.msra.mxu0 %v6377_v26  ;;  %v6398_v26 = vld [vmem:[#allocation2 + $0x118] sm:$0xff]  }
 0x400   :  { %5471 = vmatprep.subr.bf16.mxu0 %v6462_v0 }
 0x403   :  { %5472 = vmatpush3.bf16.msra.mxu0 %v6378_v52  ;;  %v2081_v52 = vpop.permute.xlu1 %2080 }
 0x404   :  { %5477 = vmatprep.subr.bf16.mxu0 %v6462_v0 }
 0x406   :  { %5474 = vmatmul.mubr.msk.bf16.vlgmr.msra.gmra.mrb[8].mxu0 %vm7760_vm1, %v1679_v42 }
 0x407   :  { %5478 = vmatpush3.bf16.msra.mxu0 %v6379_v36  ;;  %5485 = vmatprep.mubr.msk.bf16.mxu0 %vm7755_vm13, %v6462_v0 }
 0x408   :  { %5479 = vmatprep.subr.bf16.mxu0 %v6462_v0 }
 0x40b   :  { %5480 = vmatpush3.bf16.msra.mxu0 %v6380_v44 }
 0x40c   :  { %5481 = vmatprep.subr.bf16.mxu0 %v6462_v0 }
 0x40f   :  { %5482 = vmatpush3.bf16.msra.mxu0 %v6381_v54 }
 0x410   :  { %5483 = vmatprep.subr.bf16.mxu0 %v6462_v0 }
 0x413   :  { %5484 = vmatpush3.bf16.msra.mxu0 %v6382_v55 }
 0x414   :  { %5489 = vmatprep.subr.bf16.mxu0 %v6462_v0 }
 0x416   :  { %5486 = vmatmul.mubr.msk.bf16.vlgmr.msra.gmra.mrb[8].mxu0 %vm7761_vm4, %v6973_v27  ;;  %v1839_v27 = vsel %vm1594_vm8, %v1837_v63, 0  ;;  %vm7769_vm4 = vmmov %vm7760_vm1 }
 0x417   :  { %5490 = vmatpush3.bf16.msra.mxu0 %v6383_v56  ;;  %5497 = vmatprep.mubr.msk.bf16.mxu0 %vm7755_vm13, %v6462_v0 }
 0x418   :  { %5491 = vmatprep.subr.bf16.mxu0 %v6462_v0 }
 0x41b   :  { %5492 = vmatpush3.bf16.msra.mxu0 %v6384_v57 }
 0x41c   :  { %5493 = vmatprep.subr.bf16.mxu0 %v6462_v0 }
 0x41f   :  { %5494 = vmatpush3.bf16.msra.mxu0 %v6385_v58 }
 0x420   :  { %5495 = vmatprep.subr.bf16.mxu0 %v6462_v0 }
 0x423   :  { %5496 = vmatpush3.bf16.msra.mxu0 %v6386_v60 }
 0x424   :  { %5501 = vmatprep.subr.bf16.mxu0 %v6462_v0 }
 0x426   :  { %5498 = vmatmul.mubr.msk.bf16.vlgmr.msra.gmra.mrb[8].mxu0 %vm7762_vm5, %v1839_v27  ;;  %vm7770_vm5 = vmmov %vm7760_vm1 }
 0x427   :  { %5502 = vmatpush3.bf16.msra.mxu0 %v6387_v1  ;;  %5509 = vmatprep.mubr.msk.bf16.mxu0 %vm7755_vm13, %v6462_v0 }
 0x428   :  { %5503 = vmatprep.subr.bf16.mxu0 %v6462_v0 }
 0x42b   :  { %5504 = vmatpush3.bf16.msra.mxu0 %v6388_v3 }
 0x42c   :  { %5505 = vmatprep.subr.bf16.mxu0 %v6462_v0 }
 0x42f   :  { %5506 = vmatpush3.bf16.msra.mxu0 %v6389_v4 }
 0x430   :  { %5507 = vmatprep.subr.bf16.mxu0 %v6462_v0 }
 0x433   :  { %5508 = vmatpush3.bf16.msra.mxu0 %v6390_v5 }
 0x434   :  { %5513 = vmatprep.subr.bf16.mxu0 %v6462_v0 }
 0x436   :  { %5510 = vmatmul.mubr.msk.bf16.vlgmr.msra.gmra.mrb[8].mxu0 %vm7764_vm6, %v1922_v7  ;;  %vm7778_vm6 = vmmov %vm7760_vm1 }
 0x437   :  { %5514 = vmatpush3.bf16.msra.mxu0 %v6391_v16  ;;  %5521 = vmatprep.mubr.msk.bf16.mxu0 %vm7755_vm13, %v6462_v0 }
 0x438   :  { %5515 = vmatprep.subr.bf16.mxu0 %v6462_v0 }
 0x43b   :  { %5516 = vmatpush3.bf16.msra.mxu0 %v6392_v8 }
 0x43c   :  { %5517 = vmatprep.subr.bf16.mxu0 %v6462_v0 }
 0x43f   :  { %5518 = vmatpush3.bf16.msra.mxu0 %v6393_v10 }
 0x440   :  { %5519 = vmatprep.subr.bf16.mxu0 %v6462_v0 }
 0x443   :  { %5520 = vmatpush3.bf16.msra.mxu0 %v6394_v11 }
 0x444   :  { %5525 = vmatprep.subr.bf16.mxu0 %v6462_v0 }
 0x446   :  { %5522 = vmatmul.mubr.msk.bf16.vlgmr.msra.gmra.mrb[8].mxu0 %vm7765_vm7, %v6981_v61  ;;  %v2083_v61 = vsel %vm1594_vm8, %v2081_v52, 0  ;;  %vm7768_vm8 = vmmov %vm7760_vm1 }
 0x447   :  { %5526 = vmatpush3.bf16.msra.mxu0 %v6395_v12  ;;  %5533 = vmatprep.mubr.msk.bf16.mxu0 %vm7755_vm13, %v6462_v0 }
 0x448   :  { %5527 = vmatprep.subr.bf16.mxu0 %v6462_v0 }
 0x44b   :  { %5528 = vmatpush3.bf16.msra.mxu0 %v6396_v22 }
 0x44c   :  { %5529 = vmatprep.subr.bf16.mxu0 %v6462_v0 }
 0x44f   :  { %5530 = vmatpush3.bf16.msra.mxu0 %v6397_v53 }
 0x450   :  { %5531 = vmatprep.subr.bf16.mxu0 %v6462_v0 }
 0x453   :  { %5532 = vmatpush3.bf16.msra.mxu0 %v6398_v26 }
 0x454   :  { %5681 = vmatprep.subr.bf16.mxu0 %v6462_v0 }
 0x456   :  { %5534 = vmatmul.mubr.msk.bf16.vlgmr.msra.gmra.mrb[8].mxu0 %vm7766_vm2, %v2083_v61 }
 0x457   :  { %5689 = vmatprep.mubr.msk.bf16.mxu0 %vm7755_vm13, %v6462_v0 }
 0x529   :  { %v7054_v23 = vpop.f32.mrb[8].mxu0 }
 0x52a   :  { %v2171_v36 = vmul.f32 %v7054_v23, %v7054_v23  ;;  %v5535_v42 = vpop.f32.mrb[9].mxu0  ;;  %v2162_v54 = vsel %vm7767_vm3, %v7054_v23, 0.0 }
 0x52b   :  { %v7058_v44 = vpop.f32.mrb[10].mxu0 }
 0x52c   :  { %v2163_v55 = vsel %vm7760_vm1, %v7058_v44, 0.0  ;;  %v2172_v56 = vmul.f32 %v7058_v44, %v7058_v44  ;;  %v5536_v57 = vpop.f32.mrb[11].mxu0  ;;  %v2173_v60 = vsel %vm7768_vm8, %v2171_v36, 0.0 }
 0x52d   :  { %v2164_v58 = vadd.f32 %v2163_v55, %v2162_v54 }
 0x52e   :  { %v2174_v63 = vsel %vm7769_vm4, %v2172_v56, 0.0 }
 0x52f   :  { %v2165_v1 = vrot.slane %v2164_v58, 4  ;;  %v2175_v27 = vadd.f32 %v2174_v63, %v2173_v60 }
 0x531   :  { %v2166_v3 = vadd.f32 %v2165_v1, %v2164_v58  ;;  %v2176_v4 = vrot.slane %v2175_v27, 4 }
 0x533   :  { %v2167_v5 = vrot.slane %v2166_v3, 2  ;;  %v2177_v15 = vadd.f32 %v2176_v4, %v2175_v27  ;;  %v3343_v4 = vand.u32 15, %v6602_v18 }
 0x535   :  { %v2168_v16 = vadd.f32 %v2167_v5, %v2166_v3  ;;  %v2178_v7 = vrot.slane %v2177_v15, 2  ;;  %v3350_v5 = vand.u32 15, %v6605_v19 }
 0x537   :  { %v2169_v8 = vrot.slane %v2168_v16, 1  ;;  %v2179_v10 = vadd.f32 %v2178_v7, %v2177_v15 }
 0x539   :  { %v2180_v11 = vrot.slane %v2179_v10, 1  ;;  %v2170_v12 = vadd.f32 %v2169_v8, %v2168_v16 }
 0x53b   :  { %v2181_v22 = vadd.f32 %v2180_v11, %v2179_v10  ;;  %v4240_v10 = vand.u32 15, %v6595_v17 }
 0x53d   :  { %v2182_v53 = vsel %vm182_vm14, %v2170_v12, %v2181_v22 }
 0x53e   :  { %v2184_v26 = vsel %vm7770_vm5, %v2182_v53, 0 }
 0x53f   :  { %v2259_v52 = vand.u32 4294901760, %v2184_v26 }
 0x541   :  { %v2260_v61 = vsub.f32 %v2184_v26, %v2259_v52 }
 0x543   :  { %v2261_v36 = vand.u32 4294901760, %v2260_v61 }
 0x545   :  { %v2262_v42 = vsub.f32 %v2260_v61, %v2261_v36 }
 0x547   :  { %v2263_v54 = vand.u32 4294901760, %v2262_v42 }
 0x549   :  { %5554 = vmatmul.mubr.f32.vlgmr.msra.gmra.mrb[2].mxu1 %v2263_v54 }
 0x54a   :  { %6031 = vmatpush3.bf16.msra.mxu1 %v6675_v48  ;;  %5572 = vmatprep.mubr.msk.f32.mxu1 %vm7755_vm13, %v6462_v0  ;;  %v6399_v48 = vld [vmem:[%s7720_s3] sm:$0xff]  }
 0x54b   :  { %6032 = vmatprep.subr.bf16.mxu1 %v6464_v51  ;;  %5682 = vmatpush3.bf16.msra.mxu0 %v6399_v48 }
 0x54c   :  { %5683 = vmatprep.subr.bf16.mxu0 %v6462_v0 }
 0x54e   :  { %6034 = vmatpush3.bf16.msra.mxu1 %v6708_v2 }
 0x54f   :  { %6035 = vmatprep.subr.bf16.mxu1 %v6464_v51 }
 0x552   :  { %6037 = vmatpush3.bf16.msra.mxu1 %v6715_v20 }
 0x553   :  { %6038 = vmatprep.subr.bf16.mxu1 %v6464_v51 }
 0x556   :  { %6040 = vmatpush3.bf16.msra.mxu1 %v6741_v35 }
 0x557   :  { %6041 = vmatprep.subr.bf16.mxu1 %v6464_v51 }
 0x559   :  { %5573 = vmatmul.mubr.f32.vlgmr.msra.gmra.mrb[2].mxu1 %v2259_v52 }
 0x55a   :  { %6043 = vmatpush3.bf16.msra.mxu1 %v6750_v28  ;;  %5591 = vmatprep.mubr.msk.f32.mxu1 %vm7755_vm13, %v6462_v0 }
 0x55b   :  { %6044 = vmatprep.subr.bf16.mxu1 %v6464_v51 }
 0x55e   :  { %6046 = vmatpush3.bf16.msra.mxu1 %v6766_v38 }
 0x55f   :  { %6047 = vmatprep.subr.bf16.mxu1 %v6464_v51 }
 0x562   :  { %6049 = vmatpush3.bf16.msra.mxu1 %v6780_v40 }
 0x563   :  { %6050 = vmatprep.subr.bf16.mxu1 %v6464_v51 }
 0x566   :  { %6052 = vmatpush3.bf16.msra.mxu1 %v6783_v41  ;;  %v2729_v41 = vld [vmem:[%s7723_s6] sm:$0x1] }
 0x567   :  { %6053 = vmatprep.subr.bf16.mxu1 %v6464_v51 }
 0x569   :  { %5592 = vmatmul.mubr.f32.vlgmr.msra.gmra.mrb[2].mxu1 %v2260_v61 }
 0x56a   :  { %6055 = vmatpush3.bf16.msk.msra.mxu1 %vm6723_vm9, %v6465_v25  ;;  %5610 = vmatprep.mubr.msk.f32.mxu1 %vm7755_vm13, %v6462_v0 }
 0x56b   :  { %6056 = vmatprep.subr.bf16.mxu1 %v6464_v51 }
 0x56e   :  { %6058 = vmatpush3.bf16.msk.msra.mxu1 %vm6736_vm10, %v6465_v25 }
 0x56f   :  { %6059 = vmatprep.subr.bf16.mxu1 %v6464_v51 }
 0x572   :  { %6061 = vmatpush3.bf16.msk.msra.mxu1 %vm6757_vm11, %v6465_v25 }
 0x573   :  { %6062 = vmatprep.subr.bf16.mxu1 %v6464_v51 }
 0x576   :  { %6064 = vmatpush3.bf16.msk.msra.mxu1 %vm6773_vm12, %v6465_v25 }
 0x577   :  { %6065 = vmatprep.subr.bf16.mxu1 %v6464_v51 }
 0x579   :  { %5611 = vmatmul.mubr.f32.vlgmr.msra.gmra.mrb[2].mxu1 %v2261_v36 }
 0x57a   :  { %6067 = vmatpush3.bf16.msra.mxu1 %v6789_v45  ;;  %5629 = vmatprep.mubr.msk.f32.mxu1 %vm7755_vm13, %v6462_v0 }
 0x57b   :  { %6068 = vmatprep.subr.bf16.mxu1 %v6464_v51 }
 0x57e   :  { %6070 = vmatpush3.bf16.msra.mxu1 %v6795_v46 }
 0x57f   :  { %6071 = vmatprep.subr.bf16.mxu1 %v6464_v51 }
 0x582   :  { %6073 = vmatpush3.bf16.msra.mxu1 %v6797_v49  ;;  %v2750_v49 = vld [vmem:[%s7724_s7] sm:$0x1] }
 0x583   :  { %6074 = vmatprep.subr.bf16.mxu1 %v6464_v51 }
 0x586   :  { %6076 = vmatpush3.bf16.msra.mxu1 %v6799_v50 }
 0x587   :  { %6077 = vmatprep.subr.bf16.mxu1 %v6464_v51 }
 0x589   :  { %5630 = vmatmul.mubr.f32.vlgmr.msra.gmra.mrb[2].mxu1 %v2259_v52 }
 0x58a   :  { %6079 = vmatpush3.bf16.msk.msra.mxu1 %vm6723_vm9, %v6465_v25  ;;  %5648 = vmatprep.mubr.msk.f32.mxu1 %vm7755_vm13, %v6462_v0  ;;  %vm7771_vm9 = vmmov %vm7763_vm0 }
 0x58b   :  { %6080 = vmatprep.subr.bf16.mxu1 %v6464_v51 }
 0x58e   :  { %6082 = vmatpush3.bf16.msk.msra.mxu1 %vm6736_vm10, %v6465_v25 }
 0x58f   :  { %6083 = vmatprep.subr.bf16.mxu1 %v6464_v51 }
 0x592   :  { %6085 = vmatpush3.bf16.msk.msra.mxu1 %vm6757_vm11, %v6465_v25 }
 0x593   :  { %6086 = vmatprep.subr.bf16.mxu1 %v6464_v51 }
 0x596   :  { %6088 = vmatpush3.bf16.msk.msra.mxu1 %vm6773_vm12, %v6465_v25  ;;  %vm7202_vm12 = vcmp.eq.s32.totalorder %v3343_v4, %v6595_v17 }
 0x597   :  { %5651 = vmatprep.subr.mxu1 %v6462_v0  ;;  %v4884_v19 = vsel %vm7202_vm12, 1.0, %v6462_v0 }
 0x598   :  { %v7227_v22 = vsub.f32 %v4884_v19, %v4884_v19 }
 0x599   :  { %5649 = vmatmul.mubr.f32.vlgmr.msra.gmra.mrb[2].mxu1 %v2259_v52 }
 0x59a   :  { %5652 = vmatpush3.msk.msra.mxu1 %vm6895_vm15, %v6466_v33  ;;  %5653 = vmatprep.mubr.msk.f32.mxu1 %vm7755_vm13, %v6462_v0 }
 0x59b   :  { %5656 = vmatprep.subr.mxu1 %v6462_v0 }
 0x66c   :  { %v2719_v2 = vpop.f32.mrb[2].mxu1 }
 0x66d   :  { %v2723_v20 = vmul.f32 0.0078125, %v2719_v2  ;;  %v5650_v21 = vpop.f32.mrb[3].mxu1 }
 0x66f   :  { %v2724_v34 = vmul.f32 %v2723_v20, %v2723_v20 }
 0x671   :  { %v2726_v35 = vrot.slane %v2724_v34, 7 }
 0x673   :  { %v2728_v28 = vsub.f32 %v2723_v20, %v2726_v35 }
 0x675   :  { %v2730_v29 = vadd.f32 1e-05, %v2728_v28 }
 0x677   :  { %6405 = vrsqrt.f32 %v2730_v29  ;;  %v3324_v29 = vadd.s32 120, %v6584_v13 }
 0x681   :  { %v6406_v38 = vpop.eup %6405 }
 0x682   :  { %v2739_v39 = vrot.slane %v6406_v38, %v6904_v59 }
 0x684   :  { %v2740_v40 = vcombine.high %v2739_v39, %v2739_v39 }
 0x686   :  { %v2747_v45 = vrot.slane %v2740_v40, %v6904_v59 }
 0x688   :  { %v2749_v46 = vmul.f32 %v2747_v45, %v2729_v41  ;;  %v3371_v41 = vand.u32 15, %v6659_v43  ;;  %v3378_v45 = vand.u32 15, %v6673_v47 }
 0x68a   :  { %v2751_v50 = vmul.f32 %v2749_v46, %v2723_v20  ;;  %vm7275_vm3 = vcmp.eq.s32.totalorder %v3371_v41, %v6595_v17  ;;  %vm7280_vm1 = vcmp.eq.s32.totalorder %v3378_v45, %v6595_v17  ;;  %v3434_v45 = vand.u32 15, %v3324_v29 }
 0x68b   :  { %v4888_v43 = vsel %vm7275_vm3, 1.0, %v6462_v0  ;;  %v4889_v47 = vsel %vm7280_vm1, 1.0, %v6462_v0 }
 0x68c   :  { %v2752_v55 = vsub.f32 %v2750_v49, %v2751_v50 }
 0x68e   :  { %v2757_v56 = vrot.slane %v2752_v55, %v6915_v6  ;;  %v3317_v55 = vadd.s32 64, %v6584_v13 }
 0x690   :  { %v2759_v57 = vsel %vm182_vm14, %v2749_v46, %v2757_v56  ;;  %v3318_v56 = vadd.s32 72, %v6584_v13 }
 0x691   :  { %v2761_v58 = vsel %vm7771_vm9, %v2759_v57, 0  ;;  %v7292_v57 = vsub.f32 %v4888_v43, %v4888_v43 }
 0x692   :  { %v2829_v60 = vand.u32 4294901760, %v2761_v58 }
 0x694   :  { %v2830_v63 = vsub.f32 %v2761_v58, %v2829_v60  ;;  %v7294_v58 = vsub.f32 %v4889_v47, %v4889_v47 }
 0x696   :  { %v2831_v1 = vand.u32 4294901760, %v2830_v63 }
 0x698   :  { %v2832_v27 = vsub.f32 %v2830_v63, %v2831_v1 }
 0x69a   :  { %v2833_v3 = vand.u32 4294901760, %v2832_v27  ;;  %v6147_v27 = vpack.c.bf16 %v7294_v58, %v7292_v57 }
 0x69c   :  { %5654 = vmatmul.mubr.f32.vlgmr.msra.gmra.mrb[4].mxu1 %v2833_v3 }
 0x69d   :  { %5657 = vmatpush3.msra.mxu1 %v6930_v37  ;;  %5658 = vmatprep.mubr.msk.f32.mxu1 %vm7755_vm13, %v6462_v0  ;;  %v3336_v37 = vand.u32 15, %v6587_v14 }
 0x69e   :  { %5661 = vmatprep.subr.mxu1 %v6462_v0 }
 0x69f   :  { %vm3518_vm11 = vcmp.eq.s32.totalorder %v3336_v37, %v6595_v17 }
 0x6a0   :  { %v4883_v18 = vsel %vm3518_vm11, 1.0, %v6462_v0 }
 0x6a1   :  { %v7225_v12 = vsub.f32 %v4883_v18, %v4883_v18  ;;  %v3708_v18 = vand.u32 4294901760, %v7294_v58 }
 0x6a4   :  { %5659 = vmatmul.mubr.f32.vlgmr.msra.gmra.mrb[4].mxu1 %v2829_v60 }
 0x6a5   :  { %5662 = vmatpush3.msra.mxu1 %v6920_v9  ;;  %5663 = vmatprep.mubr.msk.f32.mxu1 %vm7755_vm13, %v6462_v0  ;;  %v6400_v9 = vld [vmem:[%s7720_s3 + $0x8] sm:$0xff]  }
 0x6a6   :  { %5666 = vmatprep.subr.mxu1 %v6462_v0  ;;  %5684 = vmatpush3.bf16.msra.mxu0 %v6400_v9  ;;  %v3319_v9 = vadd.s32 80, %v6584_v13 }
 0x6a7   :  { %5685 = vmatprep.subr.bf16.mxu0 %v6462_v0 }
 0x6aa   :  { %5686 = vmatpush3.bf16.msra.mxu0 %v6401_v30  ;;  %v3320_v30 = vadd.s32 88, %v6584_v13 }
 0x6ab   :  { %5687 = vmatprep.subr.bf16.mxu0 %v6462_v0 }
 0x6ac   :  { %5664 = vmatmul.mubr.f32.vlgmr.msra.gmra.mrb[4].mxu1 %v2830_v63  ;;  %v3406_v15 = vand.u32 15, %v3320_v30 }
 0x6ad   :  { %5667 = vmatpush3.msk.msra.mxu1 %vm6895_vm15, %v6466_v33  ;;  %5668 = vmatprep.mubr.msk.f32.mxu1 %vm7755_vm13, %v6462_v0 }
 0x6ae   :  { %5671 = vmatprep.subr.mxu1 %v6462_v0 }
 0x6b4   :  { %5669 = vmatmul.mubr.f32.vlgmr.msra.gmra.mrb[4].mxu1 %v2831_v1  ;;  %v3392_v1 = vand.u32 15, %v3318_v56 }
 0x6b5   :  { %5672 = vmatpush3.msra.mxu1 %v6926_v24  ;;  %5673 = vmatprep.mubr.msk.f32.mxu1 %vm7755_vm13, %v6462_v0  ;;  %v3329_v24 = vand.u32 15, %v6584_v13 }
 0x6b6   :  { %5676 = vmatprep.subr.mxu1 %v6462_v0  ;;  %vm7319_vm5 = vcmp.eq.s32.totalorder %v3392_v1, %v6595_v17 }
 0x6b7   :  { %vm3517_vm10 = vcmp.eq.s32.totalorder %v3329_v24, %v6595_v17  ;;  %v4891_v37 = vsel %vm7319_vm5, 1.0, %v6462_v0 }
 0x6b8   :  { %v4882_v7 = vsel %vm3517_vm10, 1.0, %v6462_v0  ;;  %vm7219_vm0 = vmpackc.low %vm3518_vm11, %vm3517_vm10  ;;  %vm7351_vm11 = vcmp.eq.s32.totalorder %v3406_v15, %v6595_v17  ;;  %v3701_v15 = vand.u32 4294901760, %v7292_v57 }
 0x6b9   :  { %v7223_v11 = vsub.f32 %v4882_v7, %v4882_v7  ;;  %v7340_v7 = vsub.f32 %v4891_v37, %v4891_v37 }
 0x6bb   :  { %v6138_v26 = vpack.c.bf16 %v7225_v12, %v7223_v11 }
 0x6bc   :  { %5674 = vmatmul.mubr.f32.vlgmr.msra.gmra.mrb[4].mxu1 %v2829_v60 }
 0x6bd   :  { %5677 = vmatpush3.msk.msra.mxu1 %vm6895_vm15, %v6466_v33  ;;  %5678 = vmatprep.mubr.msk.f32.mxu1 %vm7755_vm13, %v6462_v0  ;;  %v6402_v33 = vld [vmem:[%s7720_s3 + $0x18] sm:$0xff]   ;;  %vm7207_vm15 = vcmp.eq.s32.totalorder %v3350_v5, %v6595_v17  ;;  %v3399_v5 = vand.u32 15, %v3319_v9 }
 0x6be   :  { %6137 = vmatprep.subr.bf16.mxu1 %v6464_v51  ;;  %5688 = vmatpush3.bf16.msra.mxu0 %v6402_v33  ;;  %v4885_v8 = vsel %vm7207_vm15, 1.0, %v6462_v0  ;;  %vm7300_vm8 = vmpackc.low %vm7207_vm15, %vm7202_vm12 }
 0x6bf   :  { %6089 = vmatprep.subr.bf16.mxu0 %v6464_v51  ;;  %v7229_v53 = vsub.f32 %v4885_v8, %v4885_v8  ;;  %vm7346_vm10 = vcmp.eq.s32.totalorder %v3399_v5, %v6595_v17  ;;  %v3321_v8 = vadd.s32 96, %v6584_v13  ;;  %vm7374_vm12 = vmpackc.low %vm7280_vm1, %vm7275_vm3  ;;  %vm7428_vm3 = vcmp.eq.s32.totalorder %v3434_v45, %v6595_v17 }
 0x6c0   :  { %v4897_v43 = vsel %vm7428_vm3, 1.0, %v6462_v0  ;;  %vm7444_vm1 = vmpackc.low %vm7351_vm11, %vm7346_vm10 }
 0x6c1   :  { %v6141_v52 = vpack.c.bf16 %v7229_v53, %v7227_v22 }
 0x6c4   :  { %5679 = vmatmul.mubr.f32.vlgmr.msra.gmra.mrb[4].mxu1 %v2829_v60  ;;  %v3385_v60 = vand.u32 15, %v3317_v55 }
 0x6c5   :  { %5795 = vmatprep.mubr.msk.f32.mxu1 %vm7755_vm13, %v6462_v0  ;;  %6139 = vmatpush3.bf16.msra.mxu1 %v6138_v26  ;;  %v3322_v26 = vadd.s32 104, %v6584_v13 }
 0x6c6   :  { %6140 = vmatprep.subr.bf16.mxu1 %v6464_v51  ;;  %vm7311_vm4 = vcmp.eq.s32.totalorder %v3385_v60, %v6595_v17  ;;  %v3763_v60 = vsub.f32 %v4897_v43, %v4897_v43 }
 0x6c7   :  { %v4890_v24 = vsel %vm7311_vm4, 1.0, %v6462_v0 }
 0x6c8   :  { %v7329_v4 = vsub.f32 %v4890_v24, %v4890_v24  ;;  %v3764_v43 = vand.u32 4294901760, %v3763_v60 }
 0x6c9   :  { %6142 = vmatpush3.bf16.msra.mxu1 %v6141_v52 }
 0x6ca   :  { %6143 = vmatprep.subr.bf16.mxu1 %v6464_v51  ;;  %v6150_v52 = vpack.c.bf16 %v7340_v7, %v7329_v4 }
 0x797   :  { %v3205_v61 = vpop.f32.mrb[4].mxu1 }
 0x798   :  { %v3212_v36 = vrot.slane %v3205_v61, %v6915_v6  ;;  %v5680_v42 = vpop.f32.mrb[5].mxu1  ;;  %v3218_v2 = vrot.slane %v3205_v61, %v6967_v62  ;;  %v4892_v61 = vsel %vm7346_vm10, 1.0, %v6462_v0  ;;  %vm4261_vm10 = vcmask 130048  }
 0x799   :  { %v7366_v42 = vsub.f32 %v4892_v61, %v4892_v61 }
 0x79a   :  { %v3213_v54 = vmul.f32 %v3212_v36, %v7054_v23  ;;  %v3214_v48 = vmul.f32 %v3212_v36, %v7058_v44  ;;  %v3357_v23 = vand.u32 15, %v6637_v31  ;;  %v3364_v44 = vand.u32 15, %v6640_v32 }
 0x79b   :  { %v4893_v36 = vsel %vm7351_vm11, 1.0, %v6462_v0 }
 0x79c   :  { %v3219_v20 = vadd.f32 %v3218_v2, %v3213_v54  ;;  %v3220_v21 = vadd.f32 %v3218_v2, %v3214_v48  ;;  %vm7251_vm7 = vcmp.eq.s32.totalorder %v3357_v23, %v6595_v17  ;;  %vm7256_vm2 = vcmp.eq.s32.totalorder %v3364_v44, %v6595_v17 }
 0x79d   :  { %v4886_v39 = vsel %vm7251_vm7, 1.0, %v6462_v0  ;;  %v4887_v31 = vsel %vm7256_vm2, 1.0, %v6462_v0  ;;  %vm7335_vm9 = vmpackc.low %vm7256_vm2, %vm7251_vm7  ;;  %v7368_v54 = vsub.f32 %v4893_v36, %v4893_v36  ;;  %v3413_v48 = vand.u32 15, %v3321_v8 }
 0x79e   :  { %v3221_v34 = vmax.f32 %v3219_v20, 0.0  ;;  %v3222_v35 = vmax.f32 %v3220_v21, 0.0  ;;  %v7266_v40 = vsub.f32 %v4886_v39, %v4886_v39  ;;  %v7268_v32 = vsub.f32 %v4887_v31, %v4887_v31  ;;  %vm7411_vm7 = vmpackc.low %vm7319_vm5, %vm7311_vm4 }
 0x79f   :  { %v3420_v2 = vand.u32 15, %v3322_v26  ;;  %v6153_v21 = vpack.c.bf16 %v7368_v54, %v7366_v42  ;;  %vm7385_vm15 = vcmp.eq.s32.totalorder %v3413_v48, %v6595_v17  ;;  %v3702_v8 = vsub.f32 %v7292_v57, %v3701_v15 }
 0x7a0   :  { %v3223_v28 = vpack.c.bf16 %v3222_v35, %v3221_v34  ;;  %v6144_v46 = vpack.c.bf16 %v7268_v32, %v7266_v40  ;;  %v4894_v23 = vsel %vm7385_vm15, 1.0, %v6462_v0  ;;  %v3687_v9 = vand.u32 4294901760, %v7266_v40 }
 0x7a1   :  { %v7403_v38 = vsub.f32 %v4894_v23, %v4894_v23  ;;  %v3694_v30 = vand.u32 4294901760, %v7268_v32  ;;  %v3709_v26 = vsub.f32 %v7294_v58, %v3708_v18  ;;  %v3715_v36 = vand.u32 4294901760, %v7329_v4 }
 0x7a2   :  { %5690 = vmatmul.mubr.msk.bf16.vlgmr.msra.gmra.mrb[12].mxu0 %vm7778_vm6, %v3223_v28  ;;  %6145 = vmatpush3.bf16.msra.mxu1 %v6144_v46  ;;  %vm7390_vm6 = vcmp.eq.s32.totalorder %v3420_v2, %v6595_v17  ;;  %v3323_v28 = vadd.s32 112, %v6584_v13  ;;  %v3688_v33 = vsub.f32 %v7266_v40, %v3687_v9  ;;  %v3722_v40 = vand.u32 4294901760, %v7340_v7 }
 0x7a3   :  { %6091 = vmatpush3.bf16.msk.msra.mxu0 %vm7219_vm0, %v6465_v25  ;;  %5725 = vmatprep.mubr.msk.f32.mxu0 %vm7755_vm13, %v6462_v0  ;;  %v4895_v44 = vsel %vm7390_vm6, 1.0, %v6462_v0  ;;  %vm7458_vm4 = vmpackc.low %vm7390_vm6, %vm7385_vm15  ;;  %v3695_v24 = vsub.f32 %v7268_v32, %v3694_v30  ;;  %v3710_v61 = vand.u32 4294901760, %v3709_v26  ;;  %v3716_v32 = vsub.f32 %v7329_v4, %v3715_v36 }
 0x7a4   :  { %6092 = vmatprep.subr.bf16.mxu0 %v6464_v51  ;;  %6146 = vmatprep.subr.bf16.mxu1 %v6464_v51  ;;  %v7405_v39 = vsub.f32 %v4895_v44, %v4895_v44  ;;  %v3427_v31 = vand.u32 15, %v3323_v28  ;;  %v3689_v37 = vand.u32 4294901760, %v3688_v33  ;;  %v3723_v2 = vsub.f32 %v7340_v7, %v3722_v40 }
 0x7a5   :  { %v3696_v5 = vand.u32 4294901760, %v3695_v24  ;;  %v3729_v35 = vand.u32 4294901760, %v7366_v42  ;;  %v3736_v57 = vand.u32 4294901760, %v7368_v54 }
 0x7a6   :  { %6148 = vmatpush3.bf16.msra.mxu1 %v6147_v27  ;;  %v6156_v46 = vpack.c.bf16 %v7405_v39, %v7403_v38  ;;  %vm7422_vm2 = vcmp.eq.s32.totalorder %v3427_v31, %v6595_v17  ;;  %v3724_v34 = vand.u32 4294901760, %v3723_v2  ;;  %v3743_v31 = vand.u32 4294901760, %v7403_v38 }
 0x7a7   :  { %6094 = vmatpush3.bf16.msk.msra.mxu0 %vm7300_vm8, %v6465_v25  ;;  %6149 = vmatprep.subr.bf16.mxu1 %v6464_v51  ;;  %v4896_v55 = vsel %vm7422_vm2, 1.0, %v6462_v0  ;;  %vm7471_vm5 = vmpackc.low %vm7428_vm3, %vm7422_vm2  ;;  %v7485_v19 = vpack.c.bf16 %v3696_v5, %v3689_v37  ;;  %v3730_v58 = vsub.f32 %v7366_v42, %v3729_v35  ;;  %v3737_v23 = vsub.f32 %v7368_v54, %v3736_v57 }
 0x7a8   :  { %6095 = vmatprep.subr.bf16.mxu0 %v6464_v51  ;;  %v7438_v47 = vsub.f32 %v4896_v55, %v4896_v55  ;;  %v3750_v4 = vand.u32 4294901760, %v7405_v39  ;;  %v3744_v7 = vsub.f32 %v7403_v38, %v3743_v31  ;;  %v7513_v5 = vpack.c.bf16 %v3694_v30, %v3687_v9 }
 0x7a9   :  { %v3731_v44 = vand.u32 4294901760, %v3730_v58  ;;  %v3738_v29 = vand.u32 4294901760, %v3737_v23  ;;  %v7517_v38 = vpack.c.bf16 %v3722_v40, %v3715_v36 }
 0x7aa   :  { %6151 = vmatpush3.bf16.msra.mxu1 %v6150_v52  ;;  %v6159_v1 = vpack.c.bf16 %v3763_v60, %v7438_v47  ;;  %v3703_v52 = vand.u32 4294901760, %v3702_v8  ;;  %v3745_v49 = vand.u32 4294901760, %v3744_v7  ;;  %v3757_v55 = vand.u32 4294901760, %v7438_v47 }
 0x7ab   :  { %6097 = vmatpush3.bf16.msk.msra.mxu0 %vm7335_vm9, %v6465_v25  ;;  %6152 = vmatprep.subr.bf16.mxu1 %v6464_v51  ;;  %v7503_v45 = vpack.c.bf16 %v3738_v29, %v3731_v44  ;;  %v7515_v8 = vpack.c.bf16 %v3708_v18, %v3701_v15  ;;  %v7521_v26 = vpack.c.bf16 %v3750_v4, %v3743_v31  ;;  %v3659_v44 = vand.u32 4294901760, %v7223_v11 }
 0x7ac   :  { %6098 = vmatprep.subr.bf16.mxu0 %v6464_v51  ;;  %v7491_v48 = vpack.c.bf16 %v3710_v61, %v3703_v52  ;;  %v3758_v54 = vsub.f32 %v7438_v47, %v3757_v55  ;;  %v7523_v52 = vpack.c.bf16 %v3764_v43, %v3757_v55  ;;  %v3666_v31 = vand.u32 4294901760, %v7225_v12 }
 0x7ad   :  { %v3673_v55 = vand.u32 4294901760, %v7227_v22 }
 0x7ae   :  { %6154 = vmatpush3.bf16.msra.mxu1 %v6153_v21  ;;  %v3717_v21 = vand.u32 4294901760, %v3716_v32  ;;  %v3759_v33 = vand.u32 4294901760, %v3758_v54 }
 0x7af   :  { %6100 = vmatpush3.bf16.msk.msra.mxu0 %vm7374_vm12, %v6465_v25  ;;  %6155 = vmatprep.subr.bf16.mxu1 %v6464_v51 }
 0x7b0   :  { %6101 = vmatprep.subr.bf16.mxu0 %v6464_v51  ;;  %v7497_v28 = vpack.c.bf16 %v3724_v34, %v3717_v21 }
 0x7b2   :  { %6157 = vmatpush3.bf16.msra.mxu1 %v6156_v46  ;;  %v3751_v46 = vsub.f32 %v7405_v39, %v3750_v4  ;;  %v7519_v39 = vpack.c.bf16 %v3736_v57, %v3729_v35 }
 0x7b3   :  { %6103 = vmatpush3.bf16.msk.msra.mxu0 %vm7411_vm7, %v6465_v25  ;;  %6158 = vmatprep.subr.bf16.mxu1 %v6464_v51 }
 0x7b4   :  { %6104 = vmatprep.subr.bf16.mxu0 %v6464_v51  ;;  %v3752_v50 = vand.u32 4294901760, %v3751_v46  ;;  %v3660_v46 = vsub.f32 %v7223_v11, %v3659_v44 }
 0x7b6   :  { %6160 = vmatpush3.bf16.msra.mxu1 %v6159_v1  ;;  %v7508_v42 = vpack.c.bf16 %v3752_v50, %v3745_v49  ;;  %v3765_v1 = vsub.f32 %v3763_v60, %v3764_v43  ;;  %v3667_v50 = vsub.f32 %v7225_v12, %v3666_v31  ;;  %v3680_v43 = vand.u32 4294901760, %v7229_v53 }
 0x7b7   :  { %6106 = vmatpush3.bf16.msk.msra.mxu0 %vm7444_vm1, %v6465_v25  ;;  %6161 = vmatprep.subr.bf16.mxu1 %v6464_v51 }
 0x7b8   :  { %6107 = vmatprep.subr.bf16.mxu0 %v6464_v51  ;;  %v3766_v24 = vand.u32 4294901760, %v3765_v1 }
 0x7ba   :  { %v7511_v37 = vpack.c.bf16 %v3766_v24, %v3759_v33  ;;  %v3661_v33 = vand.u32 4294901760, %v3660_v46  ;;  %v3668_v24 = vand.u32 4294901760, %v3667_v50 }
 0x7bb   :  { %6109 = vmatpush3.bf16.msk.msra.mxu0 %vm7458_vm4, %v6465_v25 }
 0x7bc   :  { %6110 = vmatprep.subr.bf16.mxu0 %v6464_v51 }
 0x7bf   :  { %6112 = vmatpush3.bf16.msk.msra.mxu0 %vm7471_vm5, %v6465_v25 }
 0x7c0   :  { %6113 = vmatprep.subr.bf16.mxu0 %v6464_v51 }
 0x875   :  { %v7525_v61 = vpop.f32.mrb[12].mxu0 }
 0x876   :  { %v5691_v47 = vpop.f32.mrb[13].mxu0  ;;  %v3307_v32 = vmul.f32 %v7525_v61, %v7525_v61 }
 0x877   :  { %v7527_v60 = vpop.f32.mrb[14].mxu0  ;;  %v3674_v47 = vsub.f32 %v7227_v22, %v3673_v55 }
 0x878   :  { %v3300_v9 = vadd.f32 %v7527_v60, %v7525_v61  ;;  %v3308_v30 = vmul.f32 %v7527_v60, %v7527_v60  ;;  %v5692_v15 = vpop.f32.mrb[15].mxu0 }
 0x87a   :  { %v3301_v18 = vrot.slane %v3300_v9, 4  ;;  %v3309_v36 = vadd.f32 %v3308_v30, %v3307_v32  ;;  %v3681_v32 = vsub.f32 %v7229_v53, %v3680_v43  ;;  %v3675_v30 = vand.u32 4294901760, %v3674_v47 }
 0x87b   :  { %v6186_v53 = vpack.c.bf16 %v3666_v31, %v3659_v44  ;;  %v4233_v44 = vld [vmem:[%s7726_s9] sm:$0x1] }
 0x87c   :  { %v3302_v40 = vadd.f32 %v3301_v18, %v3300_v9  ;;  %v3310_v2 = vrot.slane %v3309_v36, 4  ;;  %v6114_v9 = vpack.c.bf16 %v3668_v24, %v3661_v33  ;;  %v3682_v15 = vand.u32 4294901760, %v3681_v32 }
 0x87e   :  { %v3303_v21 = vrot.slane %v3302_v40, 2  ;;  %v3311_v34 = vadd.f32 %v3310_v2, %v3309_v36  ;;  %v6117_v22 = vpack.c.bf16 %v3682_v15, %v3675_v30 }
 0x880   :  { %v3304_v35 = vadd.f32 %v3303_v21, %v3302_v40  ;;  %v3312_v57 = vrot.slane %v3311_v34, 2 }
 0x882   :  { %v3305_v58 = vrot.slane %v3304_v35, 1  ;;  %v3313_v23 = vadd.f32 %v3312_v57, %v3311_v34  ;;  %v4212_v57 = vld [vmem:[%s7725_s8] sm:$0x1]  ;;  %s6471_s8 = smov [#allocation5]  }
 0x883   :  { %s4747_s9 = sshll.u32 %s6471_s8, 4  ;;  %s4748_s9 = int_to_ptr.vmem [resolvable:$true] %s4747_s9 }
 0x884   :  { %v3314_v29 = vrot.slane %v3313_v23, 1  ;;  %v3306_v4 = vadd.f32 %v3305_v58, %v3304_v35  ;;  %s6433_s25 = scalar_lea.vmem %s4748_s9, 256  ;;  %p6438_p9 = scmp.lt.s32.totalorder %s4748_s9, %s4748_s9 }
 0x885   :  { %p6434_p8 = scmp.ne.s32.totalorder %s4748_s9, %s6433_s25  ;;  %p6439_p10 = scmp.lt.s32.totalorder %s6433_s25, %s6433_s25 }
 0x886   :  { %v3315_v7 = vadd.f32 %v3314_v29, %v3313_v23 }
 0x887   :  { %p6440_p11 = por %p6439_p10, %p6438_p9 }
 0x888   :  { %v3316_v49 = vsel %vm182_vm14, %v3306_v4, %v3315_v7 }
 0x889   :  { %v7542_v54 = vand.u32 4294901760, %v3316_v49  ;;  %p6441_p12 = pnand %p6440_p11, %p6434_p8 }
 0x88b   :  { %v3647_v1 = vsub.f32 %v3316_v49, %v7542_v54 }
 0x88d   :  { %5796 = vmatmul.mubr.f32.vlgmr.msra.gmra.mrb[6].mxu1 %v3647_v1  ;;  %v3648_v11 = vand.u32 4294901760, %v3647_v1 }
 0x88e   :  { %6163 = vmatpush3.bf16.msk.msra.mxu1 %vm7219_vm0, %v6465_v25  ;;  %5830 = vmatprep.mubr.msk.f32.mxu1 %vm7755_vm13, %v6462_v0 }
 0x88f   :  { %6164 = vmatprep.subr.bf16.mxu1 %v6464_v51  ;;  %v3649_v12 = vsub.f32 %v3647_v1, %v3648_v11 }
 0x891   :  { %v3650_v18 = vand.u32 4294901760, %v3649_v12 }
 0x892   :  { %6166 = vmatpush3.bf16.msk.msra.mxu1 %vm7300_vm8, %v6465_v25 }
 0x893   :  { %5726 = vmatmul.mubr.f32.vlgmr.msra.gmra.mrb[16].mxu0 %v3650_v18  ;;  %6167 = vmatprep.subr.bf16.mxu1 %v6464_v51 }
 0x894   :  { %6115 = vmatpush3.bf16.msra.mxu0 %v6114_v9  ;;  %5760 = vmatprep.mubr.msk.f32.mxu0 %vm7755_vm13, %v6462_v0 }
 0x895   :  { %6116 = vmatprep.subr.bf16.mxu0 %v6464_v51 }
 0x896   :  { %6169 = vmatpush3.bf16.msk.msra.mxu1 %vm7335_vm9, %v6465_v25 }
 0x897   :  { %6170 = vmatprep.subr.bf16.mxu1 %v6464_v51 }
 0x898   :  { %6118 = vmatpush3.bf16.msra.mxu0 %v6117_v22 }
 0x899   :  { %6119 = vmatprep.subr.bf16.mxu0 %v6464_v51 }
 0x89a   :  { %6172 = vmatpush3.bf16.msk.msra.mxu1 %vm7374_vm12, %v6465_v25 }
 0x89b   :  { %6173 = vmatprep.subr.bf16.mxu1 %v6464_v51 }
 0x89c   :  { %6121 = vmatpush3.bf16.msra.mxu0 %v7485_v19  ;;  %v6189_v19 = vpack.c.bf16 %v3680_v43, %v3673_v55 }
 0x89d   :  { %6122 = vmatprep.subr.bf16.mxu0 %v6464_v51 }
 0x89e   :  { %6175 = vmatpush3.bf16.msk.msra.mxu1 %vm7411_vm7, %v6465_v25 }
 0x89f   :  { %6176 = vmatprep.subr.bf16.mxu1 %v6464_v51 }
 0x8a0   :  { %6124 = vmatpush3.bf16.msra.mxu0 %v7491_v48 }
 0x8a1   :  { %6125 = vmatprep.subr.bf16.mxu0 %v6464_v51 }
 0x8a2   :  { %6178 = vmatpush3.bf16.msk.msra.mxu1 %vm7444_vm1, %v6465_v25 }
 0x8a3   :  { %6179 = vmatprep.subr.bf16.mxu1 %v6464_v51 }
 0x8a4   :  { %6127 = vmatpush3.bf16.msra.mxu0 %v7497_v28 }
 0x8a5   :  { %6128 = vmatprep.subr.bf16.mxu0 %v6464_v51 }
 0x8a6   :  { %6181 = vmatpush3.bf16.msk.msra.mxu1 %vm7458_vm4, %v6465_v25 }
 0x8a7   :  { %6182 = vmatprep.subr.bf16.mxu1 %v6464_v51 }
 0x8a8   :  { %6130 = vmatpush3.bf16.msra.mxu0 %v7503_v45 }
 0x8a9   :  { %6131 = vmatprep.subr.bf16.mxu0 %v6464_v51 }
 0x8aa   :  { %6184 = vmatpush3.bf16.msk.msra.mxu1 %vm7471_vm5, %v6465_v25 }
 0x8ab   :  { %6185 = vmatprep.subr.bf16.mxu1 %v6464_v51 }
 0x8ac   :  { %6133 = vmatpush3.bf16.msra.mxu0 %v7508_v42 }
 0x8ad   :  { %5831 = vmatmul.mubr.f32.vlgmr.msra.gmra.mrb[6].mxu1 %v3648_v11  ;;  %6134 = vmatprep.subr.bf16.mxu0 %v6464_v51 }
 0x8ae   :  { %6187 = vmatpush3.bf16.msra.mxu1 %v6186_v53  ;;  %5865 = vmatprep.mubr.msk.f32.mxu1 %vm7755_vm13, %v6462_v0 }
 0x8af   :  { %6188 = vmatprep.subr.bf16.mxu1 %v6464_v51 }
 0x8b0   :  { %6136 = vmatpush3.bf16.msra.mxu0 %v7511_v37 }
 0x8b1   :  { %6233 = vmatprep.subr.bf16.mxu0 %v6464_v51 }
 0x8b2   :  { %6190 = vmatpush3.bf16.msra.mxu1 %v6189_v19 }
 0x8b3   :  { %5761 = vmatmul.mubr.f32.vlgmr.msra.gmra.mrb[16].mxu0 %v7542_v54  ;;  %6191 = vmatprep.subr.bf16.mxu1 %v6464_v51 }
 0x8b4   :  { %5907 = vmatprep.mubr.msk.f32.mxu0 %vm7755_vm13, %v6462_v0 }
 0x8b6   :  { %6193 = vmatpush3.bf16.msra.mxu1 %v7513_v5 }
 0x8b7   :  { %6194 = vmatprep.subr.bf16.mxu1 %v6464_v51 }
 0x8ba   :  { %6196 = vmatpush3.bf16.msra.mxu1 %v7515_v8 }
 0x8bb   :  { %6197 = vmatprep.subr.bf16.mxu1 %v6464_v51 }
 0x8be   :  { %6199 = vmatpush3.bf16.msra.mxu1 %v7517_v38 }
 0x8bf   :  { %6200 = vmatprep.subr.bf16.mxu1 %v6464_v51 }
 0x8c2   :  { %6202 = vmatpush3.bf16.msra.mxu1 %v7519_v39 }
 0x8c3   :  { %6203 = vmatprep.subr.bf16.mxu1 %v6464_v51 }
 0x8c6   :  { %6205 = vmatpush3.bf16.msra.mxu1 %v7521_v26 }
 0x8c7   :  { %6206 = vmatprep.subr.bf16.mxu1 %v6464_v51 }
 0x8ca   :  { %6208 = vmatpush3.bf16.msra.mxu1 %v7523_v52 }
 0x8cb   :  { %6209 = vmatprep.subr.bf16.mxu1 %v6464_v51 }
 0x8cd   :  { %5866 = vmatmul.mubr.f32.vlgmr.msra.gmra.mrb[6].mxu1 %v7542_v54 }
 0x8ce   :  { %6211 = vmatpush3.bf16.msk.msra.mxu1 %vm7219_vm0, %v6465_v25  ;;  %5900 = vmatprep.mubr.msk.f32.mxu1 %vm7755_vm13, %v6462_v0  ;;  %vm4248_vm0 = vcmp.eq.s32.totalorder %v4240_v10, %v6584_v13 }
 0x8cf   :  { %6212 = vmatprep.subr.bf16.mxu1 %v6464_v51  ;;  %v4946_v63 = vsel %vm4248_vm0, 1.0, %v6462_v0 }
 0x8d0   :  { %v4344_v41 = vsub.f32 %v4946_v63, %v4946_v63 }
 0x8d2   :  { %6214 = vmatpush3.bf16.msk.msra.mxu1 %vm7300_vm8, %v6465_v25  ;;  %vm4249_vm8 = vcmp.eq.s32.totalorder %v4240_v10, %v6587_v14  ;;  %v4345_v17 = vand.u32 4294901760, %v4344_v41 }
 0x8d3   :  { %6215 = vmatprep.subr.bf16.mxu1 %v6464_v51  ;;  %v4947_v16 = vsel %vm4249_vm8, 1.0, %v6462_v0 }
 0x8d4   :  { %v4351_v56 = vsub.f32 %v4947_v16, %v4947_v16  ;;  %v4346_v27 = vsub.f32 %v4344_v41, %v4345_v17 }
 0x8d6   :  { %6217 = vmatpush3.bf16.msk.msra.mxu1 %vm7335_vm9, %v6465_v25  ;;  %vm7656_vm9 = vmpackc.low %vm4249_vm8, %vm4248_vm0  ;;  %v4352_v13 = vand.u32 4294901760, %v4351_v56  ;;  %v4347_v3 = vand.u32 4294901760, %v4346_v27  ;;  %v6240_v45 = vpack.c.bf16 %v4351_v56, %v4344_v41 }
 0x8d7   :  { %6218 = vmatprep.subr.bf16.mxu1 %v6464_v51  ;;  %6235 = vmatpush3.bf16.msk.msra.mxu0 %vm7656_vm9, %v6465_v25 }
 0x8d8   :  { %6236 = vmatprep.subr.bf16.mxu0 %v6464_v51  ;;  %v4353_v14 = vsub.f32 %v4351_v56, %v4352_v13  ;;  %v6246_v5 = vpack.c.bf16 %v4352_v13, %v4345_v17 }
 0x8da   :  { %6220 = vmatpush3.bf16.msk.msra.mxu1 %vm7374_vm12, %v6465_v25  ;;  %v4354_v48 = vand.u32 4294901760, %v4353_v14 }
 0x8db   :  { %6221 = vmatprep.subr.bf16.mxu1 %v6464_v51 }
 0x8dc   :  { %v6237_v28 = vpack.c.bf16 %v4354_v48, %v4347_v3 }
 0x8de   :  { %6223 = vmatpush3.bf16.msk.msra.mxu1 %vm7411_vm7, %v6465_v25 }
 0x8df   :  { %6224 = vmatprep.subr.bf16.mxu1 %v6464_v51 }
 0x8e2   :  { %6226 = vmatpush3.bf16.msk.msra.mxu1 %vm7444_vm1, %v6465_v25 }
 0x8e3   :  { %6227 = vmatprep.subr.bf16.mxu1 %v6464_v51 }
 0x8e6   :  { %6229 = vmatpush3.bf16.msk.msra.mxu1 %vm7458_vm4, %v6465_v25 }
 0x8e7   :  { %6230 = vmatprep.subr.bf16.mxu1 %v6464_v51 }
 0x8ea   :  { %6232 = vmatpush3.bf16.msk.msra.mxu1 %vm7471_vm5, %v6465_v25 }
 0x8ed   :  { %5901 = vmatmul.mubr.f32.vlgmr.msra.gmra.mrb[6].mxu1 %v7542_v54 }
 0x986   :  { %v3803_v42 = vpop.f32.mrb[16].mxu0 }
 0x987   :  { %v5762_v37 = vpop.f32.mrb[17].mxu0 }
 0x9c0   :  { %v4202_v8 = vpop.f32.mrb[6].mxu1 }
 0x9c1   :  { %v6252_v38 = vadd.f32 %v4202_v8, %v3803_v42  ;;  %v5902_v39 = vpop.f32.mrb[7].mxu1 }
 0x9c3   :  { %v4206_v26 = vmul.f32 0.0078125, %v6252_v38 }
 0x9c5   :  { %v4207_v52 = vmul.f32 %v4206_v26, %v4206_v26 }
 0x9c7   :  { %v4209_v36 = vrot.slane %v4207_v52, 7 }
 0x9c9   :  { %v4211_v40 = vsub.f32 %v4206_v26, %v4209_v36 }
 0x9cb   :  { %v4213_v2 = vadd.f32 1e-05, %v4211_v40 }
 0x9cd   :  { %6407 = vrsqrt.f32 %v4213_v2 }
 0x9d7   :  { %v6408_v21 = vpop.eup %6407 }
 0x9d8   :  { %v4222_v34 = vrot.slane %v6408_v21, %v6904_v59 }
 0x9da   :  { %v4223_v35 = vcombine.high %v4222_v34, %v4222_v34 }
 0x9dc   :  { %v4230_v58 = vrot.slane %v4223_v35, %v6904_v59 }
 0x9de   :  { %v4232_v23 = vmul.f32 %v4230_v58, %v4212_v57 }
 0x9e0   :  { %v4234_v29 = vmul.f32 %v4232_v23, %v4206_v26 }
 0x9e2   :  { %v4235_v31 = vsub.f32 %v4233_v44, %v4234_v29 }
 0x9e4   :  { %v4258_v4 = vrot.slane %v4235_v31, %v6915_v6 }
 0x9e6   :  { %v4260_v7 = vsel %vm182_vm14, %v4232_v23, %v4258_v4 }
 0x9e7   :  { %v4263_v46 = vsel %vm4261_vm10, %v4260_v7, 0 }
 0x9e8   :  { %v4332_v49 = vand.u32 4294901760, %v4263_v46 }
 0x9ea   :  { %v4333_v50 = vsub.f32 %v4263_v46, %v4332_v49 }
 0x9ec   :  { %v4334_v55 = vand.u32 4294901760, %v4333_v50 }
 0x9ee   :  { %v4335_v43 = vsub.f32 %v4333_v50, %v4334_v55 }
 0x9f0   :  { %v4336_v54 = vand.u32 4294901760, %v4335_v43 }
 0x9f2   :  { %5908 = vmatmul.mubr.f32.vlgmr.msra.gmra.mrb[18].mxu0 %v4336_v54 }
 0x9f3   :  { %6238 = vmatpush3.bf16.msra.mxu0 %v6237_v28  ;;  %5914 = vmatprep.mubr.msk.f32.mxu0 %vm7755_vm13, %v6462_v0 }
 0x9f4   :  { %6239 = vmatprep.subr.bf16.mxu0 %v6464_v51 }
 0x9fa   :  { %5915 = vmatmul.mubr.f32.vlgmr.msra.gmra.mrb[18].mxu0 %v4332_v49 }
 0x9fb   :  { %6241 = vmatpush3.bf16.msra.mxu0 %v6240_v45  ;;  %5921 = vmatprep.mubr.msk.f32.mxu0 %vm7755_vm13, %v6462_v0 }
 0x9fc   :  { %6242 = vmatprep.subr.bf16.mxu0 %v6464_v51 }
 0xa02   :  { %5922 = vmatmul.mubr.f32.vlgmr.msra.gmra.mrb[18].mxu0 %v4333_v50 }
 0xa03   :  { %6244 = vmatpush3.bf16.msk.msra.mxu0 %vm7656_vm9, %v6465_v25  ;;  %5928 = vmatprep.mubr.msk.f32.mxu0 %vm7755_vm13, %v6462_v0 }
 0xa04   :  { %6245 = vmatprep.subr.bf16.mxu0 %v6464_v51 }
 0xa0a   :  { %5929 = vmatmul.mubr.f32.vlgmr.msra.gmra.mrb[18].mxu0 %v4334_v55 }
 0xa0b   :  { %6247 = vmatpush3.bf16.msra.mxu0 %v6246_v5  ;;  %5935 = vmatprep.mubr.msk.f32.mxu0 %vm7755_vm13, %v6462_v0 }
 0xa0c   :  { %6248 = vmatprep.subr.bf16.mxu0 %v6464_v51 }
 0xa12   :  { %5936 = vmatmul.mubr.f32.vlgmr.msra.gmra.mrb[18].mxu0 %v4332_v49 }
 0xa13   :  { %6250 = vmatpush3.bf16.msk.msra.mxu0 %vm7656_vm9, %v6465_v25  ;;  %5942 = vmatprep.mubr.msk.f32.mxu0 %vm7755_vm13, %v6462_v0  ;;  %v6409_v25 = vld [vmem:[%s7717_s0] sm:$0xff] }
 0xa1a   :  { %5943 = vmatmul.mubr.f32.vlgmr.msra.gmra.mrb[18].mxu0 %v4332_v49 }
 0xaed   :  { %v4720_v59 = vpop.f32.mrb[18].mxu0 }
 0xaee   :  { %v4727_v1 = vrot.slane %v4720_v59, %v6915_v6  ;;  %v5944_v33 = vpop.f32.mrb[19].mxu0  ;;  %v4733_v32 = vrot.slane %v4720_v59, %v6967_v62  ;;  %v6410_v6 = vld [vmem:[%s7717_s0 + $0x8] sm:$0xff] }
 0xaf0   :  { %v4728_v24 = vmul.f32 %v4727_v1, %v7525_v61  ;;  %v4729_v47 = vmul.f32 %v4727_v1, %v7527_v60 }
 0xaf2   :  { %v4734_v51 = vadd.f32 %v4733_v32, %v4728_v24  ;;  %v4735_v11 = vadd.f32 %v4733_v32, %v4729_v47 }
 0xaf4   :  { %v4736_v0 = vadd.f32 %v6409_v25, %v4734_v51  ;;  %v4737_v12 = vadd.f32 %v6410_v6, %v4735_v11 }
 0xaf6   :  { %v4738_v9 = vmax.f32 %v4736_v0, 0.0  ;;  %v4739_v61 = vmax.f32 %v4737_v12, 0.0 }
 0xaf8   :  { %4740 = vst [vmem:[#allocation5] sm:$0xff] %v4738_v9  ;;  %4741 = vst [vmem:[#allocation5 + $0x8] sm:$0xff] %v4739_v61 }
 0xaf9   :  { %6444 = shalt.err (!%p6441_p12)
}
 0xafa   :  { %s6445_s27 = scalar_lea.hbm %s7727_s10, 256 }
 0xafb   :  { %p6446_p13 = scmp.ne.s32.totalorder %s7727_s10, %s6445_s27  ;;  %p6449_p0 = scmp.lt.u32.totalorder %s6445_s27, %s7727_s10 }
 0xafd   :  { %p6451_p1 = pnand %p6449_p0, %p6446_p13 }
 0xaff   :  { %6454 = shalt.err (!%p6451_p1)
}
 0xb00   :  { %s6472_s30 = smov 128  }
 0xb01   :  { %4753 = dma.vmem_to_hbm [thread:$0]  %s4748_s9, 256, %s7727_s10, [#allocation4], %s6472_s30, %s6472_s30, %s6469_s4  }
 0xb02   :  { %6457 = dma.done.wait [#allocation4], 256  }
 0xb03   :  { %6458 = vsyncadd [#allocation4], 4294967040 }
 0xb04   :  { %4757 = vsyncpa [#allocation3], 1 }
 0xb05   :  { %4758 = vsyncpa [#allocation4], 1 }

</bundles_post_ra>
